<compile_context>
chip_gen: v6e
topology: v6e:2x2x1
jax: 0.10.0
libtpu: 0.0.40
codegen_flags: <defaults>
</compile_context>

<pallas_src>
import functools

import jax
import jax.numpy as jnp
import numpy as np
from jax import lax
from jax.experimental import pallas as pl
from jax.experimental.pallas import tpu as pltpu

KH = KW = 5   # conv kernel size
PAD = 1       # conv padding
LANES = 128   # TPU lane width


def conv_block_kernel(lhs_ref, w_ref, o_ref, *, np_pad):
    """Fused conv(im2col matmul) + BN affine (folded) + 2x2 maxpool + ReLU.

    lhs_ref: (4*np_pad, Kp) stacked quadrant patch matrices; lane Ktot is the
             all-ones bias column (bias trick).
    w_ref:   (Kp, Cp) conv weights with BN scale folded in; row Ktot holds the
             folded bias+BN shift; zero padded to lane width.
    o_ref:   (np_pad, Cp) pooled output (valid data in [:Np, :Cout]).
    """
    # One lane-dense MXU matmul for all four pooling quadrants.
    y = jnp.dot(lhs_ref[...], w_ref[...],
                preferred_element_type=jnp.float32,
                precision=jax.lax.Precision.HIGHEST)          # (4*np_pad, Cp)

    # 2x2 maxpool == running elementwise max over the four tile-aligned
    # quadrant slices (np_pad is a multiple of 8 -> sublane aligned).
    acc = y[0 * np_pad:1 * np_pad, :]
    acc = jnp.maximum(acc, y[1 * np_pad:2 * np_pad, :])
    acc = jnp.maximum(acc, y[2 * np_pad:3 * np_pad, :])
    acc = jnp.maximum(acc, y[3 * np_pad:4 * np_pad, :])

    # ReLU once, after the max (relu(max(a,b)) == max(relu(a), relu(b))).
    o_ref[...] = jnp.maximum(acc, 0.0).astype(o_ref.dtype)


def my_conv_block(x_nchw, w_oihw, bias, gamma, beta, run_mean, run_var, eps=1e-5):
    N, Cin, H, W = x_nchw.shape
    Cout = w_oihw.shape[0]
    Hc, Wc = H + 2 * PAD - KH + 1, W + 2 * PAD - KW + 1    # conv output spatial
    Hp, Wp = Hc // 2, Wc // 2                              # maxpool output (floor)
    Np = N * Hp * Wp
    Ktot = KH * KW * Cin                                   # conv contraction size
    Kp = ((Ktot + 1 + LANES - 1) // LANES) * LANES         # +1 bias column, lane pad
    Cp = ((Cout + LANES - 1) // LANES) * LANES             # lane pad channels
    Np_pad = ((Np + 7) // 8) * 8                           # sublane pad rows

    # ---------------- wrapper glue (layout plumbing, pure JAX) ----------------
    x = jnp.transpose(x_nchw, (0, 2, 3, 1)).astype(jnp.float32)        # NHWC
    x = jnp.pad(x, ((0, 0), (PAD, PAD), (PAD, PAD), (0, 0)))           # spatial pad

    # im2col: feature index = (ky*KW + kx)*Cin + ci ; append the bias column of
    # ones in the same concat, then lane-pad K once on the big tensor.
    cols = [x[:, ky:ky + Hc, kx:kx + Wc, :] for ky in range(KH) for kx in range(KW)]
    cols.append(jnp.ones((N, Hc, Wc, 1), jnp.float32))                 # bias trick
    patches = jnp.concatenate(cols, axis=-1)                           # (N,Hc,Wc,Ktot+1)
    patches = jnp.pad(patches, ((0, 0), (0, 0), (0, 0), (0, Kp - (Ktot + 1))))

    # 2x2-pool quadrants -> single stacked, row-padded LHS (4*Np_pad, Kp)
    quads = [patches[:, dr:dr + 2 * Hp:2, dc:dc + 2 * Wp:2, :].reshape(Np, Kp)
             for dr in range(2) for dc in range(2)]
    lhs = jnp.stack(quads, axis=0)                                     # (4, Np, Kp)
    lhs = jnp.pad(lhs, ((0, 0), (0, Np_pad - Np), (0, 0)))             # (4, Np_pad, Kp)
    lhs = lhs.reshape(4 * Np_pad, Kp)

    # Fold conv bias + BatchNorm (running stats) into scale/shift; fold scale
    # into the weights and put the shift into the bias-column row.
    scale = (gamma / jnp.sqrt(run_var + eps)).astype(jnp.float32)
    shift = (beta + (bias - run_mean) * scale).astype(jnp.float32)
    w_mat = jnp.transpose(w_oihw, (2, 3, 1, 0)).reshape(Ktot, Cout).astype(jnp.float32)
    w_mat = w_mat * scale[None, :]
    w_mat = jnp.concatenate([w_mat, shift[None, :]], axis=0)           # row Ktot = shift
    w_mat = jnp.pad(w_mat, ((0, Kp - (Ktot + 1)), (0, Cp - Cout)))     # (Kp, Cp)

    # ---------------- fused Pallas kernel (whole batch, one call) -------------
    rows = 4 * Np_pad
    cost = pl.CostEstimate(
        flops=2 * rows * Kp * Cp,
        transcendentals=0,
        bytes_accessed=(rows * Kp + Kp * Cp + Np_pad * Cp) * 4,
    )
    out = pl.pallas_call(
        functools.partial(conv_block_kernel, np_pad=Np_pad),
        out_shape=jax.ShapeDtypeStruct((Np_pad, Cp), jnp.float32),
        in_specs=[pl.BlockSpec(memory_space=pltpu.MemorySpace.VMEM),
                  pl.BlockSpec(memory_space=pltpu.MemorySpace.VMEM)],
        out_specs=pl.BlockSpec(memory_space=pltpu.MemorySpace.VMEM),
        cost_estimate=cost,
    )(lhs, w_mat)

    out = out[:Np, :Cout].reshape(N, Hp, Wp, Cout)                     # drop padding
    return jnp.transpose(out, (0, 3, 1, 2))                            # back to NCHW


my_conv_block_jit = jax.jit(my_conv_block)


if __name__ == "__main__":
    key = jax.random.PRNGKey(0)
    k1, k2, k3, k4 = jax.random.split(key, 4)

    N, Cin, H, W = 2, 4, 16, 16
    Cout = 8
    dropout_p = 0.25  # identity in eval mode

    # deterministic synthetic parameters (same shapes as the PyTorch module)
    x = jax.random.normal(k1, (N, Cin, H, W), jnp.float32)
    w = jax.random.normal(k2, (Cout, Cin, KH, KW), jnp.float32) * 0.1   # Conv2d.weight
    bias = jax.random.normal(k3, (Cout,), jnp.float32) * 0.1            # Conv2d.bias
    gamma = 1.0 + 0.1 * jax.random.normal(k4, (Cout,), jnp.float32)     # BN.weight
    beta = jnp.linspace(-0.2, 0.2, Cout, dtype=jnp.float32)             # BN.bias
    run_mean = jnp.zeros((Cout,), jnp.float32)                          # BN.running_mean
    run_var = jnp.ones((Cout,), jnp.float32)                            # BN.running_var
    eps = 1e-5

    out = my_conv_block_jit(x, w, bias, gamma, beta, run_mean, run_var, eps)
    out = jax.block_until_ready(out)

    # pure-JAX reference (PyTorch eval-mode forward, NCHW), full-precision conv
    ref = lax.conv_general_dilated(
        x, w, window_strides=(1, 1), padding=((PAD, PAD), (PAD, PAD)),
        dimension_numbers=("NCHW", "OIHW", "NCHW"),
        precision=lax.Precision.HIGHEST)
    ref = ref + bias[None, :, None, None]
    ref = (ref - run_mean[None, :, None, None]) / jnp.sqrt(run_var + eps)[None, :, None, None]
    ref = ref * gamma[None, :, None, None] + beta[None, :, None, None]
    ref = jnp.maximum(ref, 0.0)
    ref = lax.reduce_window(ref, -jnp.inf, lax.max, (1, 1, 2, 2), (1, 1, 2, 2), "VALID")

    assert out.shape == ref.shape, (out.shape, ref.shape)
    np.testing.assert_allclose(np.asarray(out), np.asarray(ref), rtol=1e-4, atol=1e-4)
    print("KERNEL_OK")
</pallas_src>

<mosaic_0001>
module attributes {stable_mosaic.version = 11 : i64} {
  func.func @conv_block_kernel(%arg0: memref<416x128xf32, #tpu.memory_space<vmem>>, %arg1: memref<128x128xf32, #tpu.memory_space<vmem>>, %arg2: memref<104x128xf32, #tpu.memory_space<vmem>>) attributes {dimension_semantics = [], scalar_prefetch = 0 : i64, scratch_operands = 0 : i64, tpu.core_type = #tpu.core_type<tc>} {
    %c0 = arith.constant 0 : index
    %c0_0 = arith.constant 0 : index
    %0 = vector.load %arg0[%c0, %c0_0] : memref<416x128xf32, #tpu.memory_space<vmem>>, vector<416x128xf32>
    %c0_1 = arith.constant 0 : index
    %c0_2 = arith.constant 0 : index
    %1 = vector.load %arg1[%c0_1, %c0_2] : memref<128x128xf32, #tpu.memory_space<vmem>>, vector<128x128xf32>
    %cst = arith.constant dense<0.000000e+00> : vector<416x128xf32>
    %2 = tpu.matmul %0, %1, %cst {dimension_numbers = #tpu.dot_dimension_numbers<[1], [0], [0], [1], [0, 0, 1, 1], [], []>, precision = #tpu.contract_precision<fp32>} : vector<416x128xf32>, vector<128x128xf32>, vector<416x128xf32> -> vector<416x128xf32>
    %3 = vector.extract_strided_slice %2 {offsets = [0, 0], sizes = [104, 128], strides = [1, 1]} : vector<416x128xf32> to vector<104x128xf32>
    %4 = vector.extract_strided_slice %2 {offsets = [104, 0], sizes = [104, 128], strides = [1, 1]} : vector<416x128xf32> to vector<104x128xf32>
    %5 = arith.maximumf %3, %4 : vector<104x128xf32>
    %6 = vector.extract_strided_slice %2 {offsets = [208, 0], sizes = [104, 128], strides = [1, 1]} : vector<416x128xf32> to vector<104x128xf32>
    %7 = arith.maximumf %5, %6 : vector<104x128xf32>
    %8 = vector.extract_strided_slice %2 {offsets = [312, 0], sizes = [104, 128], strides = [1, 1]} : vector<416x128xf32> to vector<104x128xf32>
    %9 = arith.maximumf %7, %8 : vector<104x128xf32>
    %cst_3 = arith.constant 0.000000e+00 : f32
    %10 = vector.broadcast %cst_3 : f32 to vector<104x128xf32>
    %11 = arith.maximumf %9, %10 : vector<104x128xf32>
    %c0_4 = arith.constant 0 : index
    %c0_5 = arith.constant 0 : index
    %12 = vector.load %arg2[%c0_4, %c0_5] : memref<104x128xf32, #tpu.memory_space<vmem>>, vector<104x128xf32>
    tpu.vector_store %arg2[%c0_4, %c0_5], %11 {strides = array<i32>} : memref<104x128xf32, #tpu.memory_space<vmem>>, vector<104x128xf32>,
    return
  }
}

</mosaic_0001>

<bundles_post_ra>
// kernel: my_conv_block.1
= control target key start
LH: loop header
LB: loop body
LE: loop exit
PB: predicated region body
PF: predicated region fallthrough
CT: control target
= control target key end

     0   :  { %s5837_s1 = inlined_call_operand.vmem [shape: f32[128,128], index: 1, kind: input, shape index: {}]   ;;  %s5838_s0 = inlined_call_operand.vmem [shape: f32[416,128], index: 0, kind: input, shape index: {}]   ;;  %s5839_s2 = inlined_call_operand.vmem [shape: f32[104,128], index: 2, kind: output, shape index: {}]  }
   0x1   :  { %v78_v0 = vld [vmem:[%s5837_s1 + $0x78] sm:$0xff]  ;;  %v77_v1 = vld [vmem:[%s5837_s1 + $0x70] sm:$0xff]  ;;  %v76_v2 = vld [vmem:[%s5837_s1 + $0x68] sm:$0xff] }
   0x2   :  { %v4074_v3 = vand.u32 4294901760, %v78_v0  ;;  %v4076_v4 = vand.u32 4294901760, %v77_v1  ;;  %v4078_v5 = vand.u32 4294901760, %v76_v2  ;;  %v75_v6 = vld [vmem:[%s5837_s1 + $0x60] sm:$0xff]  ;;  %v74_v7 = vld [vmem:[%s5837_s1 + $0x58] sm:$0xff]  ;;  %v73_v8 = vld [vmem:[%s5837_s1 + $0x50] sm:$0xff] }
   0x3   :  { %v4089_v9 = vand.u32 4294901760, %v75_v6  ;;  %v4091_v10 = vand.u32 4294901760, %v74_v7  ;;  %v4093_v11 = vand.u32 4294901760, %v73_v8  ;;  %v72_v12 = vld [vmem:[%s5837_s1 + $0x48] sm:$0xff]  ;;  %v71_v13 = vld [vmem:[%s5837_s1 + $0x40] sm:$0xff]  ;;  %v70_v18 = vld [vmem:[%s5837_s1 + $0x38] sm:$0xff] }
   0x4   :  { %3390 = vmatprep.subr.mxu0 %v4074_v3  ;;  %v4103_v14 = vsub.f32 %v78_v0, %v4074_v3  ;;  %v4106_v15 = vsub.f32 %v77_v1, %v4076_v4  ;;  %v4108_v16 = vand.u32 4294901760, %v72_v12  ;;  %v4111_v17 = vsub.f32 %v76_v2, %v4078_v5  ;;  %v69_v25 = vld [vmem:[%s5837_s1 + $0x30] sm:$0xff]  ;;  %v68_v35 = vld [vmem:[%s5837_s1 + $0x28] sm:$0xff]  ;;  %v67_v40 = vld [vmem:[%s5837_s1 + $0x20] sm:$0xff] }
   0x5   :  { %3391 = vmatpush3.msra.mxu0 %v4074_v3  ;;  %v4118_v19 = vsub.f32 %v75_v6, %v4089_v9  ;;  %v4121_v20 = vsub.f32 %v74_v7, %v4091_v10  ;;  %v4133_v24 = vand.u32 4294901760, %v71_v13  ;;  %v4142_v27 = vand.u32 4294901760, %v70_v18  ;;  %v66_v43 = vld [vmem:[%s5837_s1 + $0x18] sm:$0xff]  ;;  %v11_v48 = vld [vmem:[%s5838_s0] sm:$0xff]  ;;  %v12_v51 = vld [vmem:[%s5838_s0 + $0x8] sm:$0xff] }
   0x6   :  { %3392 = vmatprep.subr.mxu0 %v4076_v4  ;;  %v4125_v21 = vand.u32 4294901760, %v4103_v14  ;;  %v4128_v22 = vand.u32 4294901760, %v4106_v15  ;;  %v4131_v23 = vand.u32 4294901760, %v4111_v17  ;;  %v4148_v29 = vsub.f32 %v73_v8, %v4093_v11  ;;  %v65_v60 = vld [vmem:[%s5837_s1 + $0x10] sm:$0xff]  ;;  %v64_v7 = vld [vmem:[%s5837_s1 + $0x8] sm:$0xff] }
   0x7   :  { %3393 = vmatpush3.msra.mxu0 %v4076_v4  ;;  %v4140_v26 = vand.u32 4294901760, %v4118_v19  ;;  %v4145_v28 = vand.u32 4294901760, %v4121_v20  ;;  %v4158_v33 = vsub.f32 %v72_v12, %v4108_v16  ;;  %v4161_v34 = vand.u32 4294901760, %v69_v25  ;;  %v13_v1 = vld [vmem:[%s5838_s0 + $0x10] sm:$0xff] }
   0x8   :  { %6030 = vst [vmem:[#allocation2_spill] sm:$0xff] %v4125_v21  ;;  %6031 = vst [vmem:[#allocation3_spill] sm:$0xff] %v4128_v22  ;;  %3394 = vmatprep.subr.mxu0 %v4078_v5  ;;  %v684_v30 = vsub.f32 %v4103_v14, %v4125_v21  ;;  %v691_v31 = vsub.f32 %v4106_v15, %v4128_v22  ;;  %v698_v32 = vsub.f32 %v4111_v17, %v4131_v23 }
   0x9   :  { %6032 = vst [vmem:[#allocation4_spill] sm:$0xff] %v4131_v23  ;;  %6033 = vst [vmem:[#allocation5_spill] sm:$0xff] %v4140_v26  ;;  %3395 = vmatpush3.msra.mxu0 %v4078_v5  ;;  %v705_v38 = vsub.f32 %v4118_v19, %v4140_v26  ;;  %v4170_v39 = vand.u32 4294901760, %v4148_v29  ;;  %v712_v41 = vsub.f32 %v4121_v20, %v4145_v28  ;;  %v4185_v45 = vand.u32 4294901760, %v68_v35 }
   0xa   :  { %6034 = vst [vmem:[#allocation6_spill] sm:$0xff] %v4145_v28  ;;  %3396 = vmatprep.subr.mxu0 %v4089_v9  ;;  %v685_v36 = vand.u32 4294901760, %v684_v30  ;;  %v692_v37 = vand.u32 4294901760, %v691_v31  ;;  %v4179_v42 = vsub.f32 %v71_v13, %v4133_v24  ;;  %v699_v44 = vand.u32 4294901760, %v698_v32  ;;  %v14_v13 = vld [vmem:[%s5838_s0 + $0x18] sm:$0xff] }
   0xb   :  { %6035 = vst [vmem:[#allocation7_spill] sm:$0xff] %v4170_v39  ;;  %3397 = vmatpush3.msra.mxu0 %v4089_v9  ;;  %v4188_v46 = vand.u32 4294901760, %v4158_v33  ;;  %v4191_v47 = vsub.f32 %v70_v18, %v4142_v27  ;;  %v4197_v49 = vand.u32 4294901760, %v67_v40  ;;  %v4200_v50 = vsub.f32 %v69_v25, %v4161_v34 }
   0xc   :  { %3398 = vmatprep.subr.mxu0 %v4091_v10  ;;  %3500 = vmatprep.subr.mxu1 %v685_v36  ;;  %v706_v52 = vand.u32 4294901760, %v705_v38  ;;  %v719_v53 = vsub.f32 %v4148_v29, %v4170_v39  ;;  %v4209_v54 = vand.u32 4294901760, %v4179_v42  ;;  %v4211_v55 = vand.u32 4294901760, %v66_v43 }
   0xd   :  { %6036 = vst [vmem:[#allocation8_spill] sm:$0xff] %v4188_v46  ;;  %3399 = vmatpush3.msra.mxu0 %v4091_v10  ;;  %3501 = vmatpush3.msra.mxu1 %v685_v36  ;;  %v713_v56 = vand.u32 4294901760, %v712_v41  ;;  %v4215_v57 = vand.u32 4294901760, %v4191_v47  ;;  %v4217_v58 = vand.u32 4294901760, %v11_v48  ;;  %v726_v59 = vsub.f32 %v4158_v33, %v4188_v46  ;;  %v63_v36 = vld [vmem:[%s5837_s1] sm:$0xff] }
   0xe   :  { %3400 = vmatprep.subr.mxu0 %v4093_v11  ;;  %3502 = vmatprep.subr.mxu1 %v692_v37  ;;  %6037 = vst [vmem:[#allocation9_spill] sm:$0xff] %v4209_v54  ;;  %6038 = vst [vmem:[#allocation10_spill] sm:$0xff] %v4211_v55  ;;  %v4226_v61 = vand.u32 4294901760, %v4200_v50  ;;  %v4229_v62 = vsub.f32 %v68_v35, %v4185_v45  ;;  %v4231_v63 = vand.u32 4294901760, %v12_v51  ;;  %v720_v2 = vand.u32 4294901760, %v719_v53  ;;  %v16_v53 = vld [vmem:[%s5838_s0 + $0x28] sm:$0xff] }
   0xf   :  { %3401 = vmatpush3.msra.mxu0 %v4093_v11  ;;  %3503 = vmatpush3.msra.mxu1 %v692_v37  ;;  %6039 = vst [vmem:[#allocation11_spill] sm:$0xff] %v4215_v57  ;;  %6040 = vst [vmem:[#allocation12_spill] sm:$0xff] %v4217_v58  ;;  %v4235_v0 = vsub.f32 %v67_v40, %v4197_v49  ;;  %v733_v6 = vsub.f32 %v4179_v42, %v4209_v54  ;;  %v4258_v25 = vand.u32 4294901760, %v65_v60 }
  0x10   :  { %3402 = vmatprep.subr.mxu0 %v4108_v16  ;;  %3504 = vmatprep.subr.mxu1 %v699_v44  ;;  %6041 = vst [vmem:[#allocation13_spill] sm:$0xff] %v4226_v61  ;;  %6042 = vst [vmem:[#allocation14_spill] sm:$0xff] %v4231_v63  ;;  %v4247_v8 = vsub.f32 %v11_v48, %v4217_v58  ;;  %v4250_v12 = vsub.f32 %v66_v43, %v4211_v55  ;;  %v727_v31 = vand.u32 4294901760, %v726_v59  ;;  %v15_v43 = vld [vmem:[%s5838_s0 + $0x20] sm:$0xff] }
  0x11   :  { %3403 = vmatpush3.msra.mxu0 %v4108_v16  ;;  %3505 = vmatpush3.msra.mxu1 %v699_v44  ;;  %v740_v18 = vsub.f32 %v4191_v47, %v4215_v57  ;;  %6044 = vst [vmem:[#allocation16_spill] sm:$0xff] %v4258_v25  ;;  %v4261_v30 = vsub.f32 %v12_v51, %v4231_v63  ;;  %v4267_v35 = vand.u32 4294901760, %v4229_v62  ;;  %v4272_v37 = vand.u32 4294901760, %v13_v1 }
  0x12   :  { %3404 = vmatprep.subr.mxu0 %v4133_v24  ;;  %3506 = vmatprep.subr.mxu1 %v706_v52  ;;  %6043 = vst [vmem:[#allocation15_spill] sm:$0xff] %v4247_v8  ;;  %v747_v32 = vsub.f32 %v4200_v50, %v4226_v61  ;;  %v4275_v38 = vand.u32 4294901760, %v64_v7  ;;  %v4278_v40 = vand.u32 4294901760, %v4235_v0  ;;  %v4280_v41 = vand.u32 4294901760, %v14_v13 }
  0x13   :  { %3405 = vmatpush3.msra.mxu0 %v4133_v24  ;;  %3507 = vmatpush3.msra.mxu1 %v706_v52  ;;  %6045 = vst [vmem:[#allocation17_spill] sm:$0xff] %v4261_v30  ;;  %6046 = vst [vmem:[#allocation18_spill] sm:$0xff] %v4267_v35  ;;  %v734_v44 = vand.u32 4294901760, %v733_v6  ;;  %v4288_v51 = vand.u32 4294901760, %v4250_v12  ;;  %v4291_v52 = vsub.f32 %v13_v1, %v4272_v37  ;;  %v4297_v59 = vand.u32 4294901760, %v63_v36  ;;  %v17_v1 = vld [vmem:[%s5838_s0 + $0x30] sm:$0xff] }
  0x14   :  { %3406 = vmatprep.subr.mxu0 %v4142_v27  ;;  %3508 = vmatprep.subr.mxu1 %v713_v56  ;;  %6047 = vst [vmem:[#allocation19_spill] sm:$0xff] %v4272_v37  ;;  %6048 = vst [vmem:[#allocation20_spill] sm:$0xff] %v4275_v38  ;;  %v4301_v48 = vsub.f32 %v65_v60, %v4258_v25  ;;  %v748_v61 = vand.u32 4294901760, %v747_v32  ;;  %v754_v57 = vsub.f32 %v4229_v62, %v4267_v35 }
  0x15   :  { %3407 = vmatpush3.msra.mxu0 %v4142_v27  ;;  %3509 = vmatpush3.msra.mxu1 %v713_v56  ;;  %6049 = vst [vmem:[#allocation21_spill] sm:$0xff] %v4278_v40  ;;  %6050 = vst [vmem:[#allocation22_spill] sm:$0xff] %v4280_v41  ;;  %v741_v56 = vand.u32 4294901760, %v740_v18  ;;  %v4312_v18 = vand.u32 4294901760, %v15_v43  ;;  %v761_v60 = vsub.f32 %v4235_v0, %v4278_v40  ;;  %v4321_v32 = vand.u32 4294901760, %v16_v53 }
  0x16   :  { %3408 = vmatprep.subr.mxu0 %v4161_v34  ;;  %3510 = vmatprep.subr.mxu1 %v720_v2  ;;  %6051 = vst [vmem:[#allocation23_spill] sm:$0xff] %v4288_v51  ;;  %6052 = vst [vmem:[#allocation24_spill] sm:$0xff] %v4291_v52  ;;  %v4319_v54 = vsub.f32 %v64_v7, %v4275_v38  ;;  %v6059_v35 = vand.u32 4294901760, %v4247_v8  ;;  %v768_v40 = vsub.f32 %v4250_v12, %v4288_v51 }
  0x17   :  { %3409 = vmatpush3.msra.mxu0 %v4161_v34  ;;  %3511 = vmatpush3.msra.mxu1 %v720_v2  ;;  %6053 = vst [vmem:[#allocation25_spill] sm:$0xff] %v4297_v59  ;;  %6054 = vst [vmem:[#allocation26_spill] sm:$0xff] %v4301_v48  ;;  %v4310_v2 = vsub.f32 %v14_v13, %v4280_v41  ;;  %v18_v13 = vld [vmem:[%s5838_s0 + $0x38] sm:$0xff]  ;;  %v4333_v6 = vsub.f32 %v15_v43, %v4312_v18  ;;  %v4335_v7 = vand.u32 4294901760, %v17_v1  ;;  %v19_v43 = vld [vmem:[%s5838_s0 + $0x40] sm:$0xff] }
  0x18   :  { %3410 = vmatprep.subr.mxu0 %v4185_v45  ;;  %3512 = vmatprep.subr.mxu1 %v727_v31  ;;  %6056 = vst [vmem:[#allocation28_spill] sm:$0xff] %v4312_v18  ;;  %6057 = vst [vmem:[#allocation29_spill] sm:$0xff] %v4319_v54  ;;  %v6062_v46 = vand.u32 4294901760, %v4261_v30  ;;  %v4342_v28 = vand.u32 4294901760, %v4301_v48  ;;  %v755_v51 = vand.u32 4294901760, %v754_v57  ;;  %v4353_v26 = vsub.f32 %v16_v53, %v4321_v32 }
  0x19   :  { %6055 = vst [vmem:[#allocation27_spill] sm:$0xff] %v4310_v2  ;;  %3411 = vmatpush3.msra.mxu0 %v4185_v45  ;;  %3513 = vmatpush3.msra.mxu1 %v727_v31  ;;  %6058 = vst [vmem:[#allocation30_spill] sm:$0xff] %v4321_v32  ;;  %v163_v31 = vsub.f32 %v4247_v8, %v6059_v35  ;;  %v4345_v35 = vsub.f32 %v63_v36, %v4297_v59  ;;  %v20_v36 = vld [vmem:[%s5838_s0 + $0x48] sm:$0xff]  ;;  %v762_v23 = vand.u32 4294901760, %v761_v60 }
  0x1a   :  { %3412 = vmatprep.subr.mxu0 %v4197_v49  ;;  %3514 = vmatprep.subr.mxu1 %v734_v44  ;;  %6060 = vst [vmem:[#allocation31_spill] sm:$0xff] %v4333_v6  ;;  %6061 = vst [vmem:[#allocation32_spill] sm:$0xff] %v4335_v7  ;;  %v173_v39 = vsub.f32 %v4261_v30, %v6062_v46  ;;  %v4355_v46 = vand.u32 4294901760, %v18_v13  ;;  %v6065_v22 = vand.u32 4294901760, %v4291_v52  ;;  %v4365_v57 = vand.u32 4294901760, %v4319_v54 }
  0x1b   :  { %3413 = vmatpush3.msra.mxu0 %v4197_v49  ;;  %3515 = vmatpush3.msra.mxu1 %v734_v44  ;;  %6063 = vst [vmem:[#allocation33_spill] sm:$0xff] %v4342_v28  ;;  %v21_v44 = vld [vmem:[%s5838_s0 + $0x50] sm:$0xff]  ;;  %v164_v8 = vand.u32 4294901760, %v163_v31  ;;  %v769_v21 = vand.u32 4294901760, %v768_v40  ;;  %v4375_v60 = vand.u32 4294901760, %v19_v43  ;;  %v775_v53 = vsub.f32 %v4301_v48, %v4342_v28  ;;  %v22_v28 = vld [vmem:[%s5838_s0 + $0x58] sm:$0xff] }
  0x1c   :  { %3414 = vmatprep.subr.mxu0 %v4211_v55  ;;  %3516 = vmatprep.subr.mxu1 %v741_v56  ;;  %6064 = vst [vmem:[#allocation34_spill] sm:$0xff] %v4355_v46  ;;  %v183_v30 = vsub.f32 %v4291_v52, %v6065_v22  ;;  %6066 = vst [vmem:[#allocation35_spill] sm:$0xff] %v4365_v57  ;;  %v174_v22 = vand.u32 4294901760, %v173_v39  ;;  %v4381_v52 = vand.u32 4294901760, %v4345_v35  ;;  %v6070_v40 = vand.u32 4294901760, %v4310_v2 }
  0x1d   :  { %3415 = vmatpush3.msra.mxu0 %v4211_v55  ;;  %3517 = vmatpush3.msra.mxu1 %v741_v56  ;;  %v4373_v56 = vsub.f32 %v17_v1, %v4335_v7  ;;  %6067 = vst [vmem:[#allocation36_spill] sm:$0xff] %v4375_v60  ;;  %v4383_v55 = vand.u32 4294901760, %v20_v36  ;;  %v4393_v39 = vand.u32 4294901760, %v21_v44  ;;  %v782_v48 = vsub.f32 %v4319_v54, %v4365_v57 }
  0x1e   :  { %3416 = vmatprep.subr.mxu0 %v4258_v25  ;;  %3518 = vmatprep.subr.mxu1 %v748_v61  ;;  %6068 = vst [vmem:[#allocation37_spill] sm:$0xff] %v4381_v52  ;;  %v193_v1 = vsub.f32 %v4310_v2, %v6070_v40  ;;  %v6072_v40 = vand.u32 4294901760, %v4333_v6  ;;  %v789_v57 = vsub.f32 %v4345_v35, %v4381_v52  ;;  %v6075_v2 = vand.u32 4294901760, %v4353_v26 }
  0x1f   :  { %3417 = vmatpush3.msra.mxu0 %v4258_v25  ;;  %3519 = vmatpush3.msra.mxu1 %v748_v61  ;;  %6069 = vst [vmem:[#allocation38_spill] sm:$0xff] %v4383_v55  ;;  %v4391_v61 = vsub.f32 %v18_v13, %v4355_v46  ;;  %6071 = vst [vmem:[#allocation39_spill] sm:$0xff] %v4393_v39  ;;  %v184_v25 = vand.u32 4294901760, %v183_v30  ;;  %v4405_v13 = vsub.f32 %v19_v43, %v4375_v60 }
  0x20   :  { %3418 = vmatprep.subr.mxu0 %v4275_v38  ;;  %3520 = vmatprep.subr.mxu1 %v755_v51  ;;  %v203_v31 = vsub.f32 %v4333_v6, %v6072_v40  ;;  %v776_v30 = vand.u32 4294901760, %v775_v53  ;;  %v4416_v40 = vsub.f32 %v20_v36, %v4383_v55  ;;  %v4418_v43 = vand.u32 4294901760, %v22_v28 }
  0x21   :  { %3419 = vmatpush3.msra.mxu0 %v4275_v38  ;;  %3521 = vmatpush3.msra.mxu1 %v755_v51  ;;  %6073 = vst [vmem:[#allocation40_spill] sm:$0xff] %v4405_v13  ;;  %v23_v51 = vld [vmem:[%s5838_s0 + $0x60] sm:$0xff]  ;;  %v194_v6 = vand.u32 4294901760, %v193_v1  ;;  %v213_v38 = vsub.f32 %v4353_v26, %v6075_v2  ;;  %v5894_v54 = vand.u32 4294901760, %v4391_v61  ;;  %v783_v53 = vand.u32 4294901760, %v782_v48 }
  0x22   :  { %3420 = vmatprep.subr.mxu0 %v4297_v59  ;;  %3522 = vmatprep.subr.mxu1 %v762_v23  ;;  %6074 = vst [vmem:[#allocation41_spill] sm:$0xff] %v4418_v43  ;;  %v204_v52 = vand.u32 4294901760, %v203_v31  ;;  %v6077_v2 = vand.u32 4294901760, %v4373_v56  ;;  %v790_v48 = vand.u32 4294901760, %v789_v57  ;;  %v4443_v1 = vsub.f32 %v22_v28, %v4418_v43 }
  0x23   :  { %3421 = vmatpush3.msra.mxu0 %v4297_v59  ;;  %3422 = vmatprep.mubr.f32.mxu0 %v164_v8  ;;  %v4425_v8 = vsub.f32 %v21_v44, %v4393_v39  ;;  %v4428_v59 = vand.u32 4294901760, %v23_v51  ;;  %v233_v31 = vsub.f32 %v4391_v61, %v5894_v54  ;;  %v6079_v57 = vand.u32 4294901760, %v4405_v13 }
  0x24   :  { %3523 = vmatpush3.msra.mxu1 %v762_v23  ;;  %3423 = vmatmul.mubr.f32.vlgmr.msra.gmra.mxu0 %v174_v22  ;;  %v24_v23 = vld [vmem:[%s5838_s0 + $0x68] sm:$0xff]  ;;  %v223_v44 = vsub.f32 %v4373_v56, %v6077_v2  ;;  %v5901_v54 = vand.u32 4294901760, %v4443_v1 }
  0x25   :  { %3524 = vmatprep.subr.mxu1 %v769_v21  ;;  %3425 = vmatprep.mubr.f32.mxu0 %v184_v25  ;;  %6076 = vst [vmem:[#allocation42_spill] sm:$0xff] %v4428_v59  ;;  %v25_v25 = vld [vmem:[%s5838_s0 + $0x70] sm:$0xff]  ;;  %v4449_v36 = vand.u32 4294901760, %v24_v23  ;;  %v243_v22 = vsub.f32 %v4405_v13, %v6079_v57  ;;  %v4455_v28 = vsub.f32 %v23_v51, %v4428_v59  ;;  %v6082_v51 = vand.u32 4294901760, %v4416_v40 }
  0x26   :  { %3525 = vmatpush3.msra.mxu1 %v769_v21  ;;  %3610 = vmatprep.subr.mxu0 %v4103_v14  ;;  %v214_v21 = vand.u32 4294901760, %v213_v38  ;;  %v26_v38 = vld [vmem:[%s5838_s0 + $0x78] sm:$0xff]  ;;  %v234_v2 = vand.u32 4294901760, %v233_v31  ;;  %v28_v31 = vld [vmem:[%s5838_s0 + $0x88] sm:$0xff] }
  0x27   :  { %3526 = vmatprep.subr.mxu1 %v776_v30  ;;  %3532 = vmatprep.mubr.f32.mxu1 %v4217_v58  ;;  %6078 = vst [vmem:[#allocation43_spill] sm:$0xff] %v4449_v36  ;;  %6080 = vst [vmem:[#allocation44_spill] sm:$0xff] %v4455_v28  ;;  %v253_v57 = vsub.f32 %v4416_v40, %v6082_v51  ;;  %v4477_v58 = vand.u32 4294901760, %v26_v38  ;;  %v244_v13 = vand.u32 4294901760, %v243_v22 }
  0x28   :  { %3527 = vmatpush3.msra.mxu1 %v776_v30  ;;  %3426 = vmatmul.mubr.f32.gmra.mxu0 %v194_v6  ;;  %v4457_v30 = vand.u32 4294901760, %v25_v25  ;;  %v224_v6 = vand.u32 4294901760, %v223_v44  ;;  %v4475_v44 = vsub.f32 %v24_v23, %v4449_v36  ;;  %v29_v23 = vld [vmem:[%s5838_s0 + $0x90] sm:$0xff] }
  0x29   :  { %3528 = vmatprep.subr.mxu1 %v783_v53  ;;  %3428 = vmatprep.mubr.f32.mxu0 %v204_v52  ;;  %v27_v52 = vld [vmem:[%s5838_s0 + $0x80] sm:$0xff]  ;;  %6085 = vst [vmem:[#allocation47_spill] sm:$0xff] %v4477_v58  ;;  %v254_v22 = vand.u32 4294901760, %v253_v57  ;;  %v4502_v51 = vsub.f32 %v26_v38, %v4477_v58 }
  0x2a   :  { %6081 = vst [vmem:[#allocation45_spill] sm:$0xff] %v4457_v30  ;;  %3529 = vmatpush3.msra.mxu1 %v783_v53  ;;  %3611 = vmatpush3.msra.mxu0 %v4103_v14  ;;  %v6083_v53 = vand.u32 4294901760, %v4425_v8  ;;  %6084 = vst [vmem:[#allocation46_spill] sm:$0xff] %v4475_v44 }
  0x2b   :  { %3530 = vmatprep.subr.mxu1 %v790_v48  ;;  %3612 = vmatprep.subr.mxu0 %v4106_v15 }
  0x2c   :  { %3531 = vmatpush3.msra.mxu1 %v790_v48  ;;  %3429 = vmatmul.mubr.f32.gmra.mxu0 %v214_v21  ;;  %v263_v14 = vsub.f32 %v4425_v8, %v6083_v53  ;;  %v4483_v48 = vsub.f32 %v25_v25, %v4457_v30  ;;  %v4485_v21 = vand.u32 4294901760, %v27_v52  ;;  %v273_v25 = vsub.f32 %v4443_v1, %v5901_v54 }
  0x2d   :  { %3533 = vmatmul.mubr.f32.vlgmr.msra.gmra.mxu1 %v4231_v63  ;;  %3720 = vmatprep.subr.mxu1 %v4074_v3  ;;  %v4504_v63 = vand.u32 4294901760, %v28_v31 }
  0x2e   :  { %6086 = vst [vmem:[#allocation48_spill] sm:$0xff] %v4483_v48  ;;  %6087 = vst [vmem:[#allocation49_spill] sm:$0xff] %v4485_v21  ;;  %3721 = vmatpush3.msra.mxu1 %v4074_v3  ;;  %3431 = vmatprep.mubr.f32.mxu0 %v224_v6  ;;  %v4506_v6 = vand.u32 4294901760, %v29_v23  ;;  %v264_v57 = vand.u32 4294901760, %v263_v14  ;;  %v4517_v38 = vsub.f32 %v27_v52, %v4485_v21  ;;  %v6092_v52 = vand.u32 4294901760, %v4475_v44 }
  0x2f   :  { %3535 = vmatprep.mubr.f32.mxu1 %v4272_v37  ;;  %3613 = vmatpush3.msra.mxu0 %v4106_v15  ;;  %6088 = vst [vmem:[#allocation50_spill] sm:$0xff] %v4504_v63  ;;  %v30_v15 = vld [vmem:[%s5838_s0 + $0x98] sm:$0xff]  ;;  %v31_v37 = vld [vmem:[%s5838_s0 + $0xa0] sm:$0xff] }
  0x30   :  { %3432 = vmatmul.mubr.f32.gmra.mxu0 %v234_v2  ;;  %3722 = vmatprep.subr.mxu1 %v4076_v4  ;;  %6089 = vst [vmem:[#allocation51_spill] sm:$0xff] %v4506_v6  ;;  %v6090_v2 = vand.u32 4294901760, %v4455_v28  ;;  %v4526_v14 = vand.u32 4294901760, %v30_v15 }
  0x31   :  { %3536 = vmatmul.mubr.f32.gmra.mxu1 %v4280_v41  ;;  %3434 = vmatprep.mubr.f32.mxu0 %v244_v13  ;;  %v274_v13 = vand.u32 4294901760, %v273_v25  ;;  %v4537_v41 = vsub.f32 %v29_v23, %v4506_v6  ;;  %v32_v25 = vld [vmem:[%s5838_s0 + $0xa8] sm:$0xff] }
  0x32   :  { %v283_v54 = vsub.f32 %v4455_v28, %v6090_v2  ;;  %3538 = vmatprep.mubr.f32.mxu1 %v4312_v18  ;;  %3723 = vmatpush3.msra.mxu1 %v4076_v4  ;;  %6091 = vst [vmem:[#allocation52_spill] sm:$0xff] %v4526_v14  ;;  %v293_v2 = vsub.f32 %v4475_v44, %v6092_v52  ;;  %v6094_v28 = vand.u32 4294901760, %v4483_v48  ;;  %v4547_v44 = vand.u32 4294901760, %v31_v37 }
  0x33   :  { %3614 = vmatprep.subr.mxu0 %v4111_v17  ;;  %3724 = vmatprep.subr.mxu1 %v4078_v5  ;;  %v4534_v18 = vsub.f32 %v28_v31, %v4504_v63  ;;  %6093 = vst [vmem:[#allocation53_spill] sm:$0xff] %v4537_v41  ;;  %v33_v31 = vld [vmem:[%s5838_s0 + $0xb0] sm:$0xff] }
  0x34   :  { %3435 = vmatmul.mubr.f32.gmra.mxu0 %v254_v22  ;;  %3725 = vmatpush3.msra.mxu1 %v4078_v5  ;;  %v284_v22 = vand.u32 4294901760, %v283_v54  ;;  %v303_v52 = vsub.f32 %v4483_v48, %v6094_v28  ;;  %6095 = vst [vmem:[#allocation54_spill] sm:$0xff] %v4547_v44  ;;  %v4557_v54 = vsub.f32 %v30_v15, %v4526_v14  ;;  %v4559_v28 = vand.u32 4294901760, %v32_v25 }
  0x35   :  { %3539 = vmatmul.mubr.f32.gmra.mxu1 %v4321_v32  ;;  %3437 = vmatprep.mubr.f32.mxu0 %v264_v57  ;;  %v294_v23 = vand.u32 4294901760, %v293_v2  ;;  %v6098_v57 = vand.u32 4294901760, %v4502_v51  ;;  %v6099_v15 = vand.u32 4294901760, %v4517_v38  ;;  %v4574_v2 = vand.u32 4294901760, %v33_v31 }
  0x36   :  { %3541 = vmatprep.mubr.f32.mxu1 %v4335_v7  ;;  %3615 = vmatpush3.msra.mxu0 %v4111_v17  ;;  %6096 = vst [vmem:[#allocation55_spill] sm:$0xff] %v4557_v54  ;;  %6097 = vst [vmem:[#allocation56_spill] sm:$0xff] %v4559_v28  ;;  %v5922_v17 = vand.u32 4294901760, %v4534_v18  ;;  %v304_v32 = vand.u32 4294901760, %v303_v52  ;;  %v4588_v52 = vsub.f32 %v32_v25, %v4559_v28 }
  0x37   :  { %3616 = vmatprep.subr.mxu0 %v4118_v19  ;;  %3726 = vmatprep.subr.mxu1 %v4089_v9  ;;  %v313_v53 = vsub.f32 %v4502_v51, %v6098_v57  ;;  %v323_v48 = vsub.f32 %v4517_v38, %v6099_v15  ;;  %6100 = vst [vmem:[#allocation57_spill] sm:$0xff] %v4574_v2  ;;  %v34_v57 = vld [vmem:[%s5838_s0 + $0xb8] sm:$0xff] }
  0x38   :  { %3438 = vmatmul.mubr.f32.gmra.mxu0 %v274_v13  ;;  %3727 = vmatpush3.msra.mxu1 %v4089_v9  ;;  %v4572_v13 = vsub.f32 %v31_v37, %v4547_v44  ;;  %6101 = vst [vmem:[#allocation58_spill] sm:$0xff] %v4588_v52  ;;  %v333_v7 = vsub.f32 %v4534_v18, %v5922_v17  ;;  %v36_v17 = vld [vmem:[%s5838_s0 + $0xc8] sm:$0xff] }
  0x39   :  { %3542 = vmatmul.mubr.f32.gmra.mxu1 %v4355_v46  ;;  %3440 = vmatprep.mubr.f32.mxu0 %v284_v22  ;;  %v35_v22 = vld [vmem:[%s5838_s0 + $0xc0] sm:$0xff]  ;;  %v314_v15 = vand.u32 4294901760, %v313_v53  ;;  %v4597_v46 = vand.u32 4294901760, %v34_v57  ;;  %v324_v37 = vand.u32 4294901760, %v323_v48  ;;  %v4602_v53 = vsub.f32 %v33_v31, %v4574_v2 }
  0x3a   :  { %3544 = vmatprep.mubr.f32.mxu1 %v4375_v60  ;;  %3617 = vmatpush3.msra.mxu0 %v4118_v19  ;;  %v6102_v19 = vand.u32 4294901760, %v4537_v41  ;;  %v334_v25 = vand.u32 4294901760, %v333_v7 }
  0x3b   :  { %3618 = vmatprep.subr.mxu0 %v4121_v20  ;;  %3728 = vmatprep.subr.mxu1 %v4091_v10  ;;  %6103 = vst [vmem:[#allocation59_spill] sm:$0xff] %v4597_v46 }
  0x3c   :  { %3441 = vmatmul.mubr.f32.gmra.mxu0 %v294_v23  ;;  %v343_v60 = vsub.f32 %v4537_v41, %v6102_v19  ;;  %3729 = vmatpush3.msra.mxu1 %v4091_v10  ;;  %v4604_v23 = vand.u32 4294901760, %v35_v22  ;;  %v37_v19 = vld [vmem:[%s5838_s0 + $0xd0] sm:$0xff]  ;;  %v39_v41 = vld [vmem:[%s5838_s0 + $0xe0] sm:$0xff] }
  0x3d   :  { %3545 = vmatmul.mubr.f32.gmra.mxu1 %v4383_v55  ;;  %3443 = vmatprep.mubr.f32.mxu0 %v304_v32  ;;  %v6105_v32 = vand.u32 4294901760, %v4557_v54  ;;  %v4622_v55 = vsub.f32 %v34_v57, %v4597_v46 }
  0x3e   :  { %6104 = vst [vmem:[#allocation60_spill] sm:$0xff] %v4604_v23  ;;  %3547 = vmatprep.mubr.f32.mxu1 %v4393_v39  ;;  %3619 = vmatpush3.msra.mxu0 %v4121_v20  ;;  %v4624_v39 = vand.u32 4294901760, %v36_v17  ;;  %v4626_v20 = vand.u32 4294901760, %v37_v19  ;;  %v344_v31 = vand.u32 4294901760, %v343_v60  ;;  %v4637_v57 = vsub.f32 %v35_v22, %v4604_v23 }
  0x3f   :  { %v353_v48 = vsub.f32 %v4557_v54, %v6105_v32  ;;  %3620 = vmatprep.subr.mxu0 %v4148_v29  ;;  %3730 = vmatprep.subr.mxu1 %v4093_v11  ;;  %6106 = vst [vmem:[#allocation61_spill] sm:$0xff] %v4622_v55  ;;  %v38_v32 = vld [vmem:[%s5838_s0 + $0xd8] sm:$0xff]  ;;  %v5939_v54 = vand.u32 4294901760, %v4622_v55 }
  0x40   :  { %3444 = vmatmul.mubr.f32.gmra.mxu0 %v314_v15  ;;  %3731 = vmatpush3.msra.mxu1 %v4093_v11  ;;  %6107 = vst [vmem:[#allocation62_spill] sm:$0xff] %v4624_v39  ;;  %6108 = vst [vmem:[#allocation63_spill] sm:$0xff] %v4626_v20  ;;  %v6109_v15 = vand.u32 4294901760, %v4572_v13 }
  0x41   :  { %3548 = vmatmul.mubr.f32.gmra.mxu1 %v4418_v43  ;;  %3446 = vmatprep.mubr.f32.mxu0 %v324_v37  ;;  %6110 = vst [vmem:[#allocation64_spill] sm:$0xff] %v4637_v57  ;;  %v6111_v37 = vand.u32 4294901760, %v4588_v52  ;;  %v354_v22 = vand.u32 4294901760, %v353_v48  ;;  %v6113_v43 = vand.u32 4294901760, %v4602_v53  ;;  %v4664_v48 = vand.u32 4294901760, %v39_v41 }
  0x42   :  { %v363_v7 = vsub.f32 %v4572_v13, %v6109_v15  ;;  %3550 = vmatprep.mubr.f32.mxu1 %v4428_v59  ;;  %3621 = vmatpush3.msra.mxu0 %v4148_v29  ;;  %v4649_v15 = vand.u32 4294901760, %v38_v32  ;;  %v4653_v29 = vsub.f32 %v36_v17, %v4624_v39  ;;  %v4657_v59 = vsub.f32 %v37_v19, %v4626_v20  ;;  %v40_v17 = vld [vmem:[%s5838_s0 + $0xe8] sm:$0xff]  ;;  %v41_v19 = vld [vmem:[%s5838_s0 + $0xf0] sm:$0xff] }
  0x43   :  { %v373_v60 = vsub.f32 %v4588_v52, %v6111_v37  ;;  %3622 = vmatprep.subr.mxu0 %v4158_v33  ;;  %3732 = vmatprep.subr.mxu1 %v4108_v16  ;;  %v383_v52 = vsub.f32 %v4602_v53, %v6113_v43  ;;  %6114 = vst [vmem:[#allocation66_spill] sm:$0xff] %v4664_v48 }
  0x44   :  { %6112 = vst [vmem:[#allocation65_spill] sm:$0xff] %v4649_v15  ;;  %3447 = vmatmul.mubr.f32.gmra.mxu0 %v334_v25  ;;  %3733 = vmatpush3.msra.mxu1 %v4108_v16  ;;  %v364_v37 = vand.u32 4294901760, %v363_v7  ;;  %v4675_v7 = vsub.f32 %v38_v32, %v4649_v15  ;;  %v393_v43 = vsub.f32 %v4622_v55, %v5939_v54  ;;  %v42_v32 = vld [vmem:[%s5838_s0 + $0xf8] sm:$0xff] }
  0x45   :  { %3551 = vmatmul.mubr.f32.gmra.mxu1 %v4449_v36  ;;  %3449 = vmatprep.mubr.f32.mxu0 %v344_v31  ;;  %v374_v31 = vand.u32 4294901760, %v373_v60  ;;  %v384_v60 = vand.u32 4294901760, %v383_v52  ;;  %v4695_v25 = vsub.f32 %v39_v41, %v4664_v48  ;;  %v43_v36 = vld [vmem:[%s5838_s0 + $0x100] sm:$0xff]  ;;  %v4706_v52 = vand.u32 4294901760, %v42_v32 }
  0x46   :  { %3553 = vmatprep.mubr.f32.mxu1 %v4457_v30  ;;  %3623 = vmatpush3.msra.mxu0 %v4158_v33  ;;  %6115 = vst [vmem:[#allocation67_spill] sm:$0xff] %v4675_v7  ;;  %v4685_v30 = vand.u32 4294901760, %v40_v17  ;;  %v4697_v33 = vand.u32 4294901760, %v41_v19  ;;  %v394_v41 = vand.u32 4294901760, %v393_v43  ;;  %v4724_v55 = vand.u32 4294901760, %v43_v36 }
  0x47   :  { %3624 = vmatprep.subr.mxu0 %v4179_v42  ;;  %3734 = vmatprep.subr.mxu1 %v4133_v24  ;;  %6118 = vst [vmem:[#allocation69_spill] sm:$0xff] %v4695_v25  ;;  %6120 = vst [vmem:[#allocation71_spill] sm:$0xff] %v4706_v52 }
  0x48   :  { %3450 = vmatmul.mubr.f32.gmra.mxu0 %v354_v22  ;;  %3735 = vmatpush3.msra.mxu1 %v4133_v24  ;;  %6116 = vst [vmem:[#allocation68_spill] sm:$0xff] %v4685_v30  ;;  %v6117_v22 = vand.u32 4294901760, %v4637_v57  ;;  %6119 = vst [vmem:[#allocation70_spill] sm:$0xff] %v4697_v33  ;;  %v4722_v43 = vsub.f32 %v41_v19, %v4697_v33  ;;  %v4738_v19 = vsub.f32 %v42_v32, %v4706_v52 }
  0x49   :  { %3554 = vmatmul.mubr.f32.gmra.mxu1 %v4477_v58  ;;  %3452 = vmatprep.mubr.f32.mxu0 %v364_v37  ;;  %6125 = vst [vmem:[#allocation74_spill] sm:$0xff] %v4724_v55 }
  0x4a   :  { %v403_v54 = vsub.f32 %v4637_v57, %v6117_v22  ;;  %3556 = vmatprep.mubr.f32.mxu1 %v4485_v21  ;;  %3625 = vmatpush3.msra.mxu0 %v4179_v42  ;;  %v6121_v22 = vand.u32 4294901760, %v4653_v29  ;;  %v6122_v42 = vand.u32 4294901760, %v4657_v59  ;;  %v4716_v57 = vsub.f32 %v40_v17, %v4685_v30  ;;  %6124 = vst [vmem:[#allocation73_spill] sm:$0xff] %v4722_v43  ;;  %v45_v17 = vld [vmem:[%s5838_s0 + $0x110] sm:$0xff] }
  0x4b   :  { %3626 = vmatprep.subr.mxu0 %v4191_v47  ;;  %3736 = vmatprep.subr.mxu1 %v4142_v27  ;;  %6127 = vst [vmem:[#allocation75_spill] sm:$0xff] %v4738_v19 }
  0x4c   :  { %3453 = vmatmul.mubr.f32.gmra.mxu0 %v374_v31  ;;  %v413_v21 = vsub.f32 %v4653_v29, %v6121_v22  ;;  %v423_v58 = vsub.f32 %v4657_v59, %v6122_v42  ;;  %6123 = vst [vmem:[#allocation72_spill] sm:$0xff] %v4716_v57  ;;  %3737 = vmatpush3.msra.mxu1 %v4142_v27  ;;  %v404_v37 = vand.u32 4294901760, %v403_v54  ;;  %v44_v22 = vld [vmem:[%s5838_s0 + $0x108] sm:$0xff]  ;;  %v6126_v54 = vand.u32 4294901760, %v4675_v7 }
  0x4d   :  { %3557 = vmatmul.mubr.f32.gmra.mxu1 %v4504_v63  ;;  %3455 = vmatprep.mubr.f32.mxu0 %v384_v60  ;;  %v4743_v63 = vand.u32 4294901760, %v44_v22  ;;  %v4757_v31 = vsub.f32 %v43_v36, %v4724_v55  ;;  %v6133_v36 = vand.u32 4294901760, %v4716_v57 }
  0x4e   :  { %3559 = vmatprep.mubr.f32.mxu1 %v4506_v6  ;;  %3627 = vmatpush3.msra.mxu0 %v4191_v47  ;;  %v433_v60 = vsub.f32 %v4675_v7, %v6126_v54  ;;  %v414_v42 = vand.u32 4294901760, %v413_v21  ;;  %v4745_v6 = vand.u32 4294901760, %v45_v17  ;;  %v46_v47 = vld [vmem:[%s5838_s0 + $0x118] sm:$0xff]  ;;  %v424_v32 = vand.u32 4294901760, %v423_v58  ;;  %v47_v7 = vld [vmem:[%s5838_s0 + $0x120] sm:$0xff] }
  0x4f   :  { %3628 = vmatprep.subr.mxu0 %v4200_v50  ;;  %3738 = vmatprep.subr.mxu1 %v4161_v34  ;;  %6128 = vst [vmem:[#allocation76_spill] sm:$0xff] %v4743_v63  ;;  %v6130_v54 = vand.u32 4294901760, %v4695_v25  ;;  %6131 = vst [vmem:[#allocation78_spill] sm:$0xff] %v4757_v31  ;;  %v4765_v58 = vand.u32 4294901760, %v46_v47 }
  0x50   :  { %3456 = vmatmul.mubr.f32.gmra.mxu0 %v394_v41  ;;  %6129 = vst [vmem:[#allocation77_spill] sm:$0xff] %v4745_v6  ;;  %3739 = vmatpush3.msra.mxu1 %v4161_v34  ;;  %v453_v41 = vsub.f32 %v4716_v57, %v6133_v36 }
  0x51   :  { %3560 = vmatmul.mubr.f32.gmra.mxu1 %v4526_v14  ;;  %3458 = vmatprep.mubr.f32.mxu0 %v404_v37  ;;  %v443_v21 = vsub.f32 %v4695_v25, %v6130_v54  ;;  %6132 = vst [vmem:[#allocation79_spill] sm:$0xff] %v4765_v58  ;;  %v434_v54 = vand.u32 4294901760, %v433_v60  ;;  %v6136_v14 = vand.u32 4294901760, %v4722_v43  ;;  %v4784_v25 = vand.u32 4294901760, %v47_v7 }
  0x52   :  { %3562 = vmatprep.mubr.f32.mxu1 %v4547_v44  ;;  %3629 = vmatpush3.msra.mxu0 %v4200_v50  ;;  %v4773_v50 = vsub.f32 %v44_v22, %v4743_v63  ;;  %v4776_v44 = vsub.f32 %v45_v17, %v4745_v6  ;;  %v48_v22 = vld [vmem:[%s5838_s0 + $0x128] sm:$0xff]  ;;  %v49_v17 = vld [vmem:[%s5838_s0 + $0x130] sm:$0xff]  ;;  %v454_v36 = vand.u32 4294901760, %v453_v41 }
  0x53   :  { %3630 = vmatprep.subr.mxu0 %v4229_v62  ;;  %3740 = vmatprep.subr.mxu1 %v4185_v45  ;;  %v444_v37 = vand.u32 4294901760, %v443_v21  ;;  %v463_v60 = vsub.f32 %v4722_v43, %v6136_v14  ;;  %6137 = vst [vmem:[#allocation82_spill] sm:$0xff] %v4784_v25  ;;  %v4798_v21 = vsub.f32 %v46_v47, %v4765_v58  ;;  %v6140_v47 = vand.u32 4294901760, %v4757_v31 }
  0x54   :  { %3459 = vmatmul.mubr.f32.gmra.mxu0 %v414_v42  ;;  %6134 = vst [vmem:[#allocation80_spill] sm:$0xff] %v4773_v50  ;;  %6135 = vst [vmem:[#allocation81_spill] sm:$0xff] %v4776_v44  ;;  %3741 = vmatpush3.msra.mxu1 %v4185_v45  ;;  %v5974_v42 = vand.u32 4294901760, %v4773_v50  ;;  %v4814_v41 = vand.u32 4294901760, %v49_v17 }
  0x55   :  { %3563 = vmatmul.mubr.f32.gmra.mxu1 %v4559_v28  ;;  %3461 = vmatprep.mubr.f32.mxu0 %v424_v32  ;;  %v6138_v32 = vand.u32 4294901760, %v4738_v19  ;;  %6139 = vst [vmem:[#allocation83_spill] sm:$0xff] %v4798_v21  ;;  %v483_v28 = vsub.f32 %v4757_v31, %v6140_v47 }
  0x56   :  { %3565 = vmatprep.mubr.f32.mxu1 %v4574_v2  ;;  %3631 = vmatpush3.msra.mxu0 %v4229_v62  ;;  %v4804_v2 = vand.u32 4294901760, %v48_v22  ;;  %v493_v62 = vsub.f32 %v4773_v50, %v5974_v42  ;;  %v4845_v47 = vsub.f32 %v49_v17, %v4814_v41  ;;  %v6147_v42 = vld [vmem:[#allocation26_spill] sm:$0xff]  ;;  %v6148_v17 = vld [vmem:[#allocation16_spill] sm:$0xff] }
  0x57   :  { %v473_v14 = vsub.f32 %v4738_v19, %v6138_v32  ;;  %3632 = vmatprep.subr.mxu0 %v4235_v0  ;;  %3742 = vmatprep.subr.mxu1 %v4197_v49  ;;  %v464_v32 = vand.u32 4294901760, %v463_v60  ;;  %v4812_v19 = vsub.f32 %v47_v7, %v4784_v25  ;;  %v6142_v7 = vld [vmem:[#allocation10_spill] sm:$0xff] }
  0x58   :  { %3462 = vmatmul.mubr.f32.gmra.mxu0 %v434_v54  ;;  %3743 = vmatpush3.msra.mxu1 %v4197_v49  ;;  %v50_v54 = vld [vmem:[%s5838_s0 + $0x138] sm:$0xff]  ;;  %v4834_v31 = vsub.f32 %v48_v22, %v4804_v2  ;;  %6145 = vst [vmem:[#allocation85_spill] sm:$0xff] %v4845_v47  ;;  %v53_v22 = vld [vmem:[%s5838_s0 + $0x150] sm:$0xff] }
  0x59   :  { %3566 = vmatmul.mubr.f32.gmra.mxu1 %v4597_v46  ;;  %3464 = vmatprep.mubr.f32.mxu0 %v444_v37  ;;  %6141 = vst [vmem:[#allocation84_spill] sm:$0xff] %v4812_v19  ;;  %v51_v37 = vld [vmem:[%s5838_s0 + $0x140] sm:$0xff]  ;;  %v474_v60 = vand.u32 4294901760, %v473_v14  ;;  %v52_v14 = vld [vmem:[%s5838_s0 + $0x148] sm:$0xff] }
  0x5a   :  { %3568 = vmatprep.mubr.f32.mxu1 %v4604_v23  ;;  %3633 = vmatpush3.msra.mxu0 %v4235_v0  ;;  %v6143_v23 = vand.u32 4294901760, %v4776_v44  ;;  %6144 = vst [vmem:[#allocation10_spill] sm:$0xff] %v4834_v31  ;;  %v4836_v0 = vand.u32 4294901760, %v50_v54  ;;  %v6155_v50 = vand.u32 4294901760, %v4834_v31 }
  0x5b   :  { %3634 = vmatprep.subr.mxu0 %v4250_v12  ;;  %3744 = vmatprep.subr.mxu1 %v6142_v7 }
  0x5c   :  { %3465 = vmatmul.mubr.f32.gmra.mxu0 %v454_v36  ;;  %v503_v46 = vsub.f32 %v4776_v44, %v6143_v23  ;;  %3745 = vmatpush3.msra.mxu1 %v6142_v7  ;;  %v484_v36 = vand.u32 4294901760, %v483_v28  ;;  %v4847_v23 = vand.u32 4294901760, %v51_v37  ;;  %v6146_v44 = vand.u32 4294901760, %v4798_v21 }
  0x5d   :  { %3569 = vmatmul.mubr.f32.gmra.mxu1 %v4624_v39  ;;  %3467 = vmatprep.mubr.f32.mxu0 %v464_v32  ;;  %v4857_v28 = vand.u32 4294901760, %v52_v14  ;;  %v494_v39 = vand.u32 4294901760, %v493_v62  ;;  %v4863_v43 = vsub.f32 %v50_v54, %v4836_v0 }
  0x5e   :  { %3571 = vmatprep.mubr.f32.mxu1 %v4626_v20  ;;  %3635 = vmatpush3.msra.mxu0 %v4250_v12  ;;  %v513_v32 = vsub.f32 %v4798_v21, %v6146_v44  ;;  %v4865_v20 = vand.u32 4294901760, %v53_v22  ;;  %v54_v12 = vld [vmem:[%s5838_s0 + $0x158] sm:$0xff]  ;;  %v504_v44 = vand.u32 4294901760, %v503_v46  ;;  %v4877_v54 = vsub.f32 %v51_v37, %v4847_v23  ;;  %v55_v21 = vld [vmem:[%s5838_s0 + $0x160] sm:$0xff] }
  0x5f   :  { %3636 = vmatprep.subr.mxu0 %v6147_v42  ;;  %3746 = vmatprep.subr.mxu1 %v6148_v17  ;;  %6149 = vst [vmem:[#allocation26_spill] sm:$0xff] %v4863_v43  ;;  %v4887_v46 = vand.u32 4294901760, %v54_v12  ;;  %v4904_v57 = vand.u32 4294901760, %v55_v21 }
  0x60   :  { %3468 = vmatmul.mubr.f32.gmra.mxu0 %v474_v60  ;;  %3747 = vmatpush3.msra.mxu1 %v6148_v17  ;;  %v6150_v60 = vand.u32 4294901760, %v4812_v19  ;;  %6151 = vst [vmem:[#allocation86_spill] sm:$0xff] %v4877_v54  ;;  %v514_v37 = vand.u32 4294901760, %v513_v32  ;;  %v4896_v17 = vsub.f32 %v53_v22, %v4865_v20  ;;  %v57_v22 = vld [vmem:[%s5838_s0 + $0x170] sm:$0xff] }
  0x61   :  { %3572 = vmatmul.mubr.f32.gmra.mxu1 %v4649_v15  ;;  %3470 = vmatprep.mubr.f32.mxu0 %v484_v36  ;;  %v4885_v36 = vsub.f32 %v52_v14, %v4857_v28  ;;  %v6153_v15 = vld [vmem:[#allocation29_spill] sm:$0xff]  ;;  %v6157_v14 = vand.u32 4294901760, %v4845_v47 }
  0x62   :  { %v523_v62 = vsub.f32 %v4812_v19, %v6150_v60  ;;  %3574 = vmatprep.mubr.f32.mxu1 %v4664_v48  ;;  %3637 = vmatpush3.msra.mxu0 %v6147_v42  ;;  %v6154_v60 = vld [vmem:[#allocation20_spill] sm:$0xff]  ;;  %v533_v48 = vsub.f32 %v4834_v31, %v6155_v50  ;;  %v6002_v19 = vand.u32 4294901760, %v4863_v43  ;;  %6156 = vst [vmem:[#allocation29_spill] sm:$0xff] %v4896_v17  ;;  %v56_v50 = vld [vmem:[%s5838_s0 + $0x168] sm:$0xff] }
  0x63   :  { %6152 = vst [vmem:[#allocation87_spill] sm:$0xff] %v4885_v36  ;;  %3638 = vmatprep.subr.mxu0 %v6153_v15  ;;  %3748 = vmatprep.subr.mxu1 %v6154_v60 }
  0x64   :  { %3471 = vmatmul.mubr.f32.gmra.mxu0 %v494_v39  ;;  %3749 = vmatpush3.msra.mxu1 %v6154_v60  ;;  %v524_v42 = vand.u32 4294901760, %v523_v62  ;;  %v543_v39 = vsub.f32 %v4845_v47, %v6157_v14  ;;  %v4916_v62 = vsub.f32 %v54_v12, %v4887_v46  ;;  %v6158_v14 = vld [vmem:[#allocation25_spill] sm:$0xff]  ;;  %v534_v32 = vand.u32 4294901760, %v533_v48 }
  0x65   :  { %3575 = vmatmul.mubr.f32.gmra.mxu1 %v4685_v30  ;;  %3473 = vmatprep.mubr.f32.mxu0 %v504_v44  ;;  %v4924_v47 = vand.u32 4294901760, %v56_v50  ;;  %v6159_v12 = vand.u32 4294901760, %v4877_v54  ;;  %v4932_v48 = vsub.f32 %v55_v21, %v4904_v57  ;;  %v6162_v30 = vld [vmem:[#allocation2_spill] sm:$0xff] }
  0x66   :  { %3577 = vmatprep.mubr.f32.mxu1 %v4697_v33  ;;  %3639 = vmatpush3.msra.mxu0 %v6153_v15  ;;  %v553_v33 = vsub.f32 %v4863_v43, %v6002_v19  ;;  %v544_v15 = vand.u32 4294901760, %v543_v39  ;;  %v58_v19 = vld [vmem:[%s5838_s0 + $0x178] sm:$0xff]  ;;  %v6161_v39 = vand.u32 4294901760, %v4885_v36 }
  0x67   :  { %3640 = vmatprep.subr.mxu0 %v4345_v35  ;;  %3750 = vmatprep.subr.mxu1 %v6158_v14  ;;  %v563_v44 = vsub.f32 %v4877_v54, %v6159_v12  ;;  %6160 = vst [vmem:[#allocation20_spill] sm:$0xff] %v4932_v48  ;;  %v4954_v43 = vsub.f32 %v56_v50, %v4924_v47 }
  0x68   :  { %3474 = vmatmul.mubr.f32.gmra.mxu0 %v514_v37  ;;  %3751 = vmatpush3.msra.mxu1 %v6158_v14  ;;  %v4934_v37 = vand.u32 4294901760, %v57_v22  ;;  %v573_v12 = vsub.f32 %v4885_v36, %v6161_v39 }
  0x69   :  { %3578 = vmatmul.mubr.f32.gmra.mxu1 %v4706_v52  ;;  %3476 = vmatprep.mubr.f32.mxu0 %v524_v42  ;;  %v59_v42 = vld [vmem:[%s5838_s0 + $0x180] sm:$0xff]  ;;  %v554_v52 = vand.u32 4294901760, %v553_v33  ;;  %v564_v39 = vand.u32 4294901760, %v563_v44  ;;  %v61_v33 = vld [vmem:[%s5838_s0 + $0x190] sm:$0xff]  ;;  %v6164_v44 = vand.u32 4294901760, %v4916_v62  ;;  %v6027_v21 = vand.u32 4294901760, %v4954_v43 }
  0x6a   :  { %3580 = vmatprep.mubr.f32.mxu1 %v4724_v55  ;;  %3641 = vmatpush3.msra.mxu0 %v4345_v35  ;;  %v6163_v55 = vand.u32 4294901760, %v4896_v17  ;;  %v4956_v35 = vand.u32 4294901760, %v58_v19  ;;  %v4961_v36 = vsub.f32 %v57_v22, %v4934_v37  ;;  %v574_v50 = vand.u32 4294901760, %v573_v12 }
  0x6b   :  { %3830 = vmatprep.subr.mxu0 %v6162_v30  ;;  %3940 = vmatprep.subr.mxu1 %v4074_v3 }
  0x6c   :  { %3477 = vmatmul.mubr.f32.gmra.mxu0 %v534_v32  ;;  %v583_v54 = vsub.f32 %v4896_v17, %v6163_v55  ;;  %v4963_v32 = vand.u32 4294901760, %v59_v42  ;;  %v60_v55 = vld [vmem:[%s5838_s0 + $0x188] sm:$0xff] }
  0x6d   :  { %3581 = vmatmul.mubr.f32.gmra.mxu1 %v4743_v63  ;;  %3479 = vmatprep.mubr.f32.mxu0 %v544_v15  ;;  %v593_v15 = vsub.f32 %v4916_v62, %v6164_v44  ;;  %v4977_v63 = vsub.f32 %v58_v19, %v4956_v35  ;;  %v4979_v17 = vand.u32 4294901760, %v60_v55  ;;  %v62_v19 = vld [vmem:[%s5838_s0 + $0x198] sm:$0xff] }
  0x6e   :  { %3583 = vmatprep.mubr.f32.mxu1 %v4745_v6  ;;  %v584_v22 = vand.u32 4294901760, %v583_v54  ;;  %v6165_v6 = vand.u32 4294901760, %v4932_v48  ;;  %v4987_v44 = vsub.f32 %v59_v42, %v4963_v32  ;;  %v5002_v42 = vand.u32 4294901760, %v62_v19 }
  0x6f   :  { %v594_v54 = vand.u32 4294901760, %v593_v15  ;;  %v5000_v31 = vsub.f32 %v60_v55, %v4979_v17 }
  0x70   :  { %3480 = vmatmul.mubr.f32.gmra.mxu0 %v554_v52  ;;  %v603_v12 = vsub.f32 %v4932_v48, %v6165_v6  ;;  %v4989_v52 = vand.u32 4294901760, %v61_v33  ;;  %v6028_v6 = vand.u32 4294901760, %v4977_v63  ;;  %v6166_v48 = vand.u32 4294901760, %v4961_v36 }
  0x71   :  { %3584 = vmatmul.mubr.f32.gmra.mxu1 %v4765_v58  ;;  %3482 = vmatprep.mubr.f32.mxu0 %v564_v39  ;;  %v613_v39 = vsub.f32 %v4954_v43, %v6027_v21 }
  0x72   :  { %3586 = vmatprep.mubr.f32.mxu1 %v4784_v25  ;;  %v604_v58 = vand.u32 4294901760, %v603_v12  ;;  %v623_v15 = vsub.f32 %v4961_v36, %v6166_v48  ;;  %v5010_v25 = vsub.f32 %v61_v33, %v4989_v52  ;;  %v633_v21 = vsub.f32 %v4977_v63, %v6028_v6 }
  0x73   :  { %v614_v55 = vand.u32 4294901760, %v613_v39  ;;  %v5018_v12 = vsub.f32 %v62_v19, %v5002_v42 }
  0x74   :  { %3483 = vmatmul.mubr.f32.gmra.mxu0 %v574_v50  ;;  %v6029_v50 = vand.u32 4294901760, %v4987_v44  ;;  %v624_v48 = vand.u32 4294901760, %v623_v15  ;;  %v634_v39 = vand.u32 4294901760, %v633_v21 }
  0x75   :  { %3587 = vmatmul.mubr.f32.gmra.mxu1 %v4804_v2  ;;  %3485 = vmatprep.mubr.f32.mxu0 %v584_v22  ;;  %v652_v22 = vand.u32 4294901760, %v5000_v31  ;;  %v672_v19 = vand.u32 4294901760, %v5018_v12 }
  0x76   :  { %3589 = vmatprep.mubr.f32.mxu1 %v4814_v41  ;;  %v643_v33 = vsub.f32 %v4987_v44, %v6029_v50 }
  0x77   :  { %v653_v6 = vsub.f32 %v5000_v31, %v652_v22  ;;  %v673_v21 = vsub.f32 %v5018_v12, %v672_v19 }
  0x78   :  { %3486 = vmatmul.mubr.f32.gmra.mxu0 %v594_v54  ;;  %v662_v54 = vand.u32 4294901760, %v5010_v25 }
  0x79   :  { %3590 = vmatmul.mubr.f32.gmra.mxu1 %v4836_v0  ;;  %3488 = vmatprep.mubr.f32.mxu0 %v604_v58  ;;  %v644_v58 = vand.u32 4294901760, %v643_v33  ;;  %v654_v50 = vand.u32 4294901760, %v653_v6  ;;  %v6167_v6 = vld [vmem:[#allocation15_spill] sm:$0xff]  ;;  %v6168_v33 = vld [vmem:[#allocation17_spill] sm:$0xff] }
  0x7a   :  { %3592 = vmatprep.mubr.f32.mxu1 %v4847_v23  ;;  %v663_v15 = vsub.f32 %v5010_v25, %v662_v54 }
  0x7c   :  { %3489 = vmatmul.mubr.f32.gmra.mxu0 %v614_v55  ;;  %v664_v55 = vand.u32 4294901760, %v663_v15  ;;  %v6172_v15 = vld [vmem:[#allocation31_spill] sm:$0xff] }
  0x7d   :  { %3593 = vmatmul.mubr.f32.gmra.mxu1 %v4857_v28  ;;  %3491 = vmatprep.mubr.f32.mxu0 %v624_v48  ;;  %v674_v48 = vand.u32 4294901760, %v673_v21  ;;  %v6173_v21 = vand.u32 4294901760, %v6167_v6 }
  0x7e   :  { %3595 = vmatprep.mubr.f32.mxu1 %v4865_v20 }
  0x80   :  { %3492 = vmatmul.mubr.f32.gmra.mxu0 %v634_v39  ;;  %v6169_v39 = vld [vmem:[#allocation24_spill] sm:$0xff] }
  0x81   :  { %3596 = vmatmul.mubr.f32.gmra.mxu1 %v4887_v46  ;;  %3494 = vmatprep.mubr.f32.mxu0 %v644_v58  ;;  %v6171_v58 = vld [vmem:[#allocation27_spill] sm:$0xff] }
  0x82   :  { %3598 = vmatprep.mubr.f32.mxu1 %v4904_v57 }
  0x84   :  { %3495 = vmatmul.mubr.f32.gmra.mxu0 %v654_v50  ;;  %v6170_v50 = vld [vmem:[#allocation3_spill] sm:$0xff] }
  0x85   :  { %3599 = vmatmul.mubr.f32.gmra.mxu1 %v4924_v47  ;;  %3497 = vmatprep.mubr.f32.mxu0 %v664_v55  ;;  %v6174_v55 = vld [vmem:[#allocation4_spill] sm:$0xff] }
  0x86   :  { %3601 = vmatprep.mubr.f32.mxu1 %v4934_v37 }
  0x88   :  { %3498 = vmatmul.mubr.f32.gmra.mxu0 %v674_v48  ;;  %v6175_v48 = vand.u32 4294901760, %v6168_v33 }
  0x89   :  { %3602 = vmatmul.mubr.f32.gmra.mxu1 %v4956_v35  ;;  %3642 = vmatprep.mubr.f32.mxu0 %v6167_v6  ;;  %v6177_v6 = vand.u32 4294901760, %v6171_v58 }
  0x8a   :  { %3604 = vmatprep.mubr.f32.mxu1 %v4963_v32 }
  0x8c   :  { %3643 = vmatmul.mubr.f32.vlgmr.msra.gmra.mxu0 %v6168_v33  ;;  %v6178_v33 = vld [vmem:[#allocation40_spill] sm:$0xff] }
  0x8d   :  { %3605 = vmatmul.mubr.f32.gmra.mxu1 %v4979_v17  ;;  %3645 = vmatprep.mubr.f32.mxu0 %v6169_v39 }
  0x8e   :  { %3607 = vmatprep.mubr.f32.mxu1 %v4989_v52  ;;  %3831 = vmatpush3.msra.mxu0 %v6162_v30  ;;  %v6176_v30 = vand.u32 4294901760, %v6169_v39  ;;  %v6182_v39 = vand.u32 4294901760, %v4373_v56 }
  0x8f   :  { %3832 = vmatprep.subr.mxu0 %v6170_v50 }
  0x90   :  { %3646 = vmatmul.mubr.f32.gmra.mxu0 %v6171_v58  ;;  %v6183_v58 = vld [vmem:[#allocation6_spill] sm:$0xff] }
  0x91   :  { %3608 = vmatmul.mubr.f32.gmra.mxu1 %v5002_v42  ;;  %3648 = vmatprep.mubr.f32.mxu0 %v6172_v15 }
  0x92   :  { %3752 = vmatprep.mubr.f32.mxu1 %v6173_v21  ;;  %3833 = vmatpush3.msra.mxu0 %v6170_v50  ;;  %v6179_v50 = vand.u32 4294901760, %v6172_v15  ;;  %v6186_v15 = vand.u32 4294901760, %v6178_v33  ;;  %v6189_v21 = vand.u32 4294901760, %v4416_v40 }
  0x93   :  { %3834 = vmatprep.subr.mxu0 %v6174_v55 }
  0x94   :  { %3649 = vmatmul.mubr.f32.gmra.mxu0 %v4353_v26 }
  0x95   :  { %3753 = vmatmul.mubr.f32.vlgmr.msra.gmra.mxu1 %v6175_v48  ;;  %3651 = vmatprep.mubr.f32.mxu0 %v4373_v56  ;;  %v6187_v56 = vld [vmem:[#allocation7_spill] sm:$0xff]  ;;  %v6192_v48 = vld [vmem:[#allocation8_spill] sm:$0xff] }
  0x96   :  { %3941 = vmatpush3.msra.mxu1 %v4074_v3  ;;  %3755 = vmatprep.mubr.f32.mxu1 %v6176_v30  ;;  %v6180_v3 = vld [vmem:[#allocation5_spill] sm:$0xff] }
  0x97   :  { %3942 = vmatprep.subr.mxu1 %v4076_v4  ;;  %3835 = vmatpush3.msra.mxu0 %v6174_v55  ;;  %v6191_v55 = vand.u32 4294901760, %v4425_v8 }
  0x98   :  { %3652 = vmatmul.mubr.f32.gmra.mxu0 %v4391_v61  ;;  %3943 = vmatpush3.msra.mxu1 %v4076_v4  ;;  %v6181_v4 = vand.u32 4294901760, %v4353_v26  ;;  %v6185_v26 = vld [vmem:[#allocation44_spill] sm:$0xff] }
  0x99   :  { %3756 = vmatmul.mubr.f32.gmra.mxu1 %v6177_v6  ;;  %3654 = vmatprep.mubr.f32.mxu0 %v6178_v33  ;;  %v6199_v6 = vld [vmem:[#allocation11_spill] sm:$0xff]  ;;  %v6201_v33 = vand.u32 4294901760, %v4502_v51 }
  0x9a   :  { %3758 = vmatprep.mubr.f32.mxu1 %v6179_v50  ;;  %3944 = vmatprep.subr.mxu1 %v4078_v5  ;;  %v6202_v50 = vand.u32 4294901760, %v4517_v38 }
  0x9b   :  { %3945 = vmatpush3.msra.mxu1 %v4078_v5  ;;  %3836 = vmatprep.subr.mxu0 %v6180_v3  ;;  %v6184_v5 = vand.u32 4294901760, %v4391_v61  ;;  %v6190_v61 = vld [vmem:[#allocation48_spill] sm:$0xff] }
  0x9c   :  { %3655 = vmatmul.mubr.f32.gmra.mxu0 %v4416_v40  ;;  %3946 = vmatprep.subr.mxu1 %v4089_v9  ;;  %v6194_v40 = vand.u32 4294901760, %v6185_v26  ;;  %v6198_v30 = vand.u32 4294901760, %v6190_v61 }
  0x9d   :  { %3759 = vmatmul.mubr.f32.gmra.mxu1 %v6181_v4  ;;  %3657 = vmatprep.mubr.f32.mxu0 %v4425_v8  ;;  %v6195_v8 = vld [vmem:[#allocation9_spill] sm:$0xff]  ;;  %v6205_v4 = vand.u32 4294901760, %v4534_v18 }
  0x9e   :  { %3761 = vmatprep.mubr.f32.mxu1 %v6182_v39  ;;  %3837 = vmatpush3.msra.mxu0 %v6180_v3  ;;  %v6203_v3 = vld [vmem:[#allocation13_spill] sm:$0xff] }
  0x9f   :  { %3947 = vmatpush3.msra.mxu1 %v4089_v9  ;;  %3838 = vmatprep.subr.mxu0 %v6183_v58  ;;  %v6188_v9 = vld [vmem:[#allocation46_spill] sm:$0xff] }
  0xa0   :  { %3658 = vmatmul.mubr.f32.gmra.mxu0 %v4443_v1  ;;  %3948 = vmatprep.subr.mxu1 %v4091_v10 }
  0xa1   :  { %3762 = vmatmul.mubr.f32.gmra.mxu1 %v6184_v5  ;;  %3660 = vmatprep.mubr.f32.mxu0 %v6185_v26  ;;  %v6212_v5 = vld [vmem:[#allocation21_spill] sm:$0xff]  ;;  %v6214_v26 = vand.u32 4294901760, %v4602_v53 }
  0xa2   :  { %3764 = vmatprep.mubr.f32.mxu1 %v6186_v15  ;;  %3839 = vmatpush3.msra.mxu0 %v6183_v58  ;;  %v6211_v58 = vand.u32 4294901760, %v4572_v13 }
  0xa3   :  { %3949 = vmatpush3.msra.mxu1 %v4091_v10  ;;  %3840 = vmatprep.subr.mxu0 %v6187_v56  ;;  %v6193_v10 = vand.u32 4294901760, %v4443_v1  ;;  %v6197_v1 = vld [vmem:[#allocation53_spill] sm:$0xff] }
  0xa4   :  { %3661 = vmatmul.mubr.f32.gmra.mxu0 %v6188_v9  ;;  %3950 = vmatprep.subr.mxu1 %v4093_v11 }
  0xa5   :  { %3765 = vmatmul.mubr.f32.gmra.mxu1 %v6189_v21  ;;  %3663 = vmatprep.mubr.f32.mxu0 %v6190_v61  ;;  %v6222_v21 = vld [vmem:[#allocation16_spill] sm:$0xff]  ;;  %v6223_v61 = vand.u32 4294901760, %v4653_v29 }
  0xa6   :  { %3767 = vmatprep.mubr.f32.mxu1 %v6191_v55  ;;  %3841 = vmatpush3.msra.mxu0 %v6187_v56  ;;  %v6218_v56 = vld [vmem:[#allocation69_spill] sm:$0xff] }
  0xa7   :  { %3951 = vmatpush3.msra.mxu1 %v4093_v11  ;;  %3842 = vmatprep.subr.mxu0 %v6192_v48  ;;  %v6196_v11 = vand.u32 4294901760, %v6188_v9  ;;  %v6224_v55 = vld [vmem:[#allocation73_spill] sm:$0xff] }
  0xa8   :  { %3664 = vmatmul.mubr.f32.gmra.mxu0 %v4502_v51  ;;  %3952 = vmatprep.subr.mxu1 %v4108_v16  ;;  %v6206_v51 = vand.u32 4294901760, %v6197_v1 }
  0xa9   :  { %3768 = vmatmul.mubr.f32.gmra.mxu1 %v6193_v10  ;;  %3666 = vmatprep.mubr.f32.mxu0 %v4517_v38  ;;  %v6207_v38 = vld [vmem:[#allocation18_spill] sm:$0xff]  ;;  %v6226_v10 = vld [vmem:[#allocation35_spill] sm:$0xff] }
  0xaa   :  { %3770 = vmatprep.mubr.f32.mxu1 %v6194_v40  ;;  %3843 = vmatpush3.msra.mxu0 %v6192_v48  ;;  %v6225_v48 = vand.u32 4294901760, %v4657_v59 }
  0xab   :  { %3953 = vmatpush3.msra.mxu1 %v4108_v16  ;;  %3844 = vmatprep.subr.mxu0 %v6195_v8  ;;  %v6200_v16 = vld [vmem:[#allocation55_spill] sm:$0xff] }
  0xac   :  { %3667 = vmatmul.mubr.f32.gmra.mxu0 %v4534_v18  ;;  %3954 = vmatprep.subr.mxu1 %v4133_v24  ;;  %v6209_v39 = vand.u32 4294901760, %v6200_v16  ;;  %v6210_v18 = vld [vmem:[#allocation64_spill] sm:$0xff] }
  0xad   :  { %3771 = vmatmul.mubr.f32.gmra.mxu1 %v6196_v11  ;;  %3669 = vmatprep.mubr.f32.mxu0 %v6197_v1  ;;  %v6219_v9 = vand.u32 4294901760, %v6210_v18  ;;  %v6232_v11 = vld [vmem:[#allocation80_spill] sm:$0xff] }
  0xae   :  { %3773 = vmatprep.mubr.f32.mxu1 %v6198_v30  ;;  %3845 = vmatpush3.msra.mxu0 %v6195_v8  ;;  %v6230_v8 = vand.u32 4294901760, %v6218_v56  ;;  %v6234_v30 = vld [vmem:[#allocation81_spill] sm:$0xff] }
  0xaf   :  { %3955 = vmatpush3.msra.mxu1 %v4133_v24  ;;  %3846 = vmatprep.subr.mxu0 %v6199_v6  ;;  %v6204_v24 = vld [vmem:[#allocation58_spill] sm:$0xff] }
  0xb0   :  { %3670 = vmatmul.mubr.f32.gmra.mxu0 %v6200_v16  ;;  %3956 = vmatprep.subr.mxu1 %v4142_v27  ;;  %v6236_v16 = vld [vmem:[#allocation83_spill] sm:$0xff] }
  0xb1   :  { %3774 = vmatmul.mubr.f32.gmra.mxu1 %v6201_v33  ;;  %3672 = vmatprep.mubr.f32.mxu0 %v4572_v13  ;;  %v6215_v13 = vld [vmem:[#allocation23_spill] sm:$0xff]  ;;  %v6238_v33 = vld [vmem:[#allocation84_spill] sm:$0xff] }
  0xb2   :  { %3776 = vmatprep.mubr.f32.mxu1 %v6202_v50  ;;  %3847 = vmatpush3.msra.mxu0 %v6199_v6  ;;  %v6235_v6 = vand.u32 4294901760, %v6224_v55 }
  0xb3   :  { %3957 = vmatpush3.msra.mxu1 %v4142_v27  ;;  %3848 = vmatprep.subr.mxu0 %v6203_v3  ;;  %v6208_v27 = vld [vmem:[#allocation61_spill] sm:$0xff] }
  0xb4   :  { %3673 = vmatmul.mubr.f32.gmra.mxu0 %v6204_v24  ;;  %3958 = vmatprep.subr.mxu1 %v4161_v34  ;;  %v6217_v15 = vand.u32 4294901760, %v6208_v27 }
  0xb5   :  { %3777 = vmatmul.mubr.f32.gmra.mxu1 %v6205_v4  ;;  %3675 = vmatprep.mubr.f32.mxu0 %v4602_v53  ;;  %v6220_v53 = vld [vmem:[#allocation33_spill] sm:$0xff] }
  0xb6   :  { %3779 = vmatprep.mubr.f32.mxu1 %v6206_v51  ;;  %3849 = vmatpush3.msra.mxu0 %v6203_v3  ;;  %v6240_v3 = vld [vmem:[#allocation10_spill] sm:$0xff]  ;;  %v6242_v4 = vld [vmem:[#allocation85_spill] sm:$0xff]  ;;  %v6243_v51 = vand.u32 4294901760, %v6234_v30 }
  0xb7   :  { %3959 = vmatpush3.msra.mxu1 %v4161_v34  ;;  %3850 = vmatprep.subr.mxu0 %v6207_v38  ;;  %v6213_v34 = vand.u32 4294901760, %v6204_v24  ;;  %v6241_v24 = vand.u32 4294901760, %v6232_v11 }
  0xb8   :  { %3676 = vmatmul.mubr.f32.gmra.mxu0 %v6208_v27  ;;  %3960 = vmatprep.subr.mxu1 %v4185_v45  ;;  %v6246_v27 = vld [vmem:[#allocation86_spill] sm:$0xff] }
  0xb9   :  { %3780 = vmatmul.mubr.f32.gmra.mxu1 %v6209_v39  ;;  %3678 = vmatprep.mubr.f32.mxu0 %v6210_v18  ;;  %v6247_v39 = vand.u32 4294901760, %v6238_v33  ;;  %v6248_v18 = vld [vmem:[#allocation87_spill] sm:$0xff] }
  0xba   :  { %3782 = vmatprep.mubr.f32.mxu1 %v6211_v58  ;;  %3851 = vmatpush3.msra.mxu0 %v6207_v38  ;;  %v6245_v38 = vand.u32 4294901760, %v6236_v16  ;;  %v6249_v58 = vand.u32 4294901760, %v6240_v3 }
  0xbb   :  { %3961 = vmatpush3.msra.mxu1 %v4185_v45  ;;  %3852 = vmatprep.subr.mxu0 %v6212_v5  ;;  %v6216_v45 = vld [vmem:[#allocation67_spill] sm:$0xff] }
  0xbc   :  { %3679 = vmatmul.mubr.f32.gmra.mxu0 %v4653_v29  ;;  %3962 = vmatprep.subr.mxu1 %v4197_v49  ;;  %v6228_v40 = vand.u32 4294901760, %v6216_v45  ;;  %v6229_v29 = vld [vmem:[#allocation78_spill] sm:$0xff] }
  0xbd   :  { %3783 = vmatmul.mubr.f32.gmra.mxu1 %v6213_v34  ;;  %3681 = vmatprep.mubr.f32.mxu0 %v4657_v59  ;;  %v6231_v59 = vld [vmem:[#allocation37_spill] sm:$0xff]  ;;  %v6239_v50 = vand.u32 4294901760, %v6229_v29  ;;  %v6251_v34 = vand.u32 4294901760, %v6242_v4 }
  0xbe   :  { %3785 = vmatprep.mubr.f32.mxu1 %v6214_v26  ;;  %3853 = vmatpush3.msra.mxu0 %v6212_v5  ;;  %v6250_v5 = vld [vmem:[#allocation29_spill] sm:$0xff] }
  0xbf   :  { %3963 = vmatpush3.msra.mxu1 %v4197_v49  ;;  %3854 = vmatprep.subr.mxu0 %v6215_v13  ;;  %v6221_v49 = vld [vmem:[#allocation72_spill] sm:$0xff] }
  0xc0   :  { %3682 = vmatmul.mubr.f32.gmra.mxu0 %v6216_v45  ;;  %3964 = vmatprep.subr.mxu1 %v6142_v7  ;;  %v6233_v1 = vand.u32 4294901760, %v6221_v49  ;;  %v6254_v45 = vand.u32 4294901760, %v6246_v27 }
  0xc1   :  { %3786 = vmatmul.mubr.f32.gmra.mxu1 %v6217_v15  ;;  %3684 = vmatprep.mubr.f32.mxu0 %v6218_v56  ;;  %v6255_v56 = vand.u32 4294901760, %v6248_v18 }
  0xc2   :  { %3788 = vmatprep.mubr.f32.mxu1 %v6219_v9  ;;  %3855 = vmatpush3.msra.mxu0 %v6215_v13  ;;  %v6253_v13 = vld [vmem:[#allocation20_spill] sm:$0xff] }
  0xc3   :  { %3965 = vmatpush3.msra.mxu1 %v6142_v7  ;;  %3856 = vmatprep.subr.mxu0 %v6220_v53  ;;  %v6227_v7 = vld [vmem:[#allocation75_spill] sm:$0xff] }
  0xc4   :  { %3685 = vmatmul.mubr.f32.gmra.mxu0 %v6221_v49  ;;  %3966 = vmatprep.subr.mxu1 %v6222_v21 }
  0xc5   :  { %3789 = vmatmul.mubr.f32.gmra.mxu1 %v6223_v61  ;;  %3687 = vmatprep.mubr.f32.mxu0 %v6224_v55  ;;  %v6258_v55 = vand.u32 4294901760, %v6253_v13 }
  0xc6   :  { %3791 = vmatprep.mubr.f32.mxu1 %v6225_v48  ;;  %3857 = vmatpush3.msra.mxu0 %v6220_v53  ;;  %v6256_v53 = vand.u32 4294901760, %v6250_v5 }
  0xc7   :  { %3967 = vmatpush3.msra.mxu1 %v6222_v21  ;;  %3858 = vmatprep.subr.mxu0 %v6226_v10  ;;  %v6257_v21 = vand.u32 4294901760, %v4916_v62 }
  0xc8   :  { %3688 = vmatmul.mubr.f32.gmra.mxu0 %v6227_v7  ;;  %3968 = vmatprep.subr.mxu1 %v6154_v60 }
  0xc9   :  { %3792 = vmatmul.mubr.f32.gmra.mxu1 %v6228_v40  ;;  %3690 = vmatprep.mubr.f32.mxu0 %v6229_v29 }
  0xca   :  { %3794 = vmatprep.mubr.f32.mxu1 %v6230_v8  ;;  %3859 = vmatpush3.msra.mxu0 %v6226_v10 }
  0xcb   :  { %3969 = vmatpush3.msra.mxu1 %v6154_v60  ;;  %3860 = vmatprep.subr.mxu0 %v6231_v59  ;;  %v6237_v60 = vand.u32 4294901760, %v6227_v7  ;;  %v6259_v7 = vand.u32 4294901760, %v4954_v43 }
  0xcc   :  { %3691 = vmatmul.mubr.f32.gmra.mxu0 %v6232_v11  ;;  %3970 = vmatprep.subr.mxu1 %v6158_v14 }
  0xcd   :  { %3795 = vmatmul.mubr.f32.gmra.mxu1 %v6233_v1  ;;  %3693 = vmatprep.mubr.f32.mxu0 %v6234_v30  ;;  %v6261_v30 = vand.u32 4294901760, %v4977_v63 }
  0xce   :  { %3797 = vmatprep.mubr.f32.mxu1 %v6235_v6  ;;  %3861 = vmatpush3.msra.mxu0 %v6231_v59 }
  0xcf   :  { %3971 = vmatpush3.msra.mxu1 %v6158_v14  ;;  %v6244_v14 = vld [vmem:[#allocation26_spill] sm:$0xff] }
  0xd0   :  { %3694 = vmatmul.mubr.f32.gmra.mxu0 %v6236_v16  ;;  %v6252_v26 = vand.u32 4294901760, %v6244_v14 }
  0xd1   :  { %3798 = vmatmul.mubr.f32.gmra.mxu1 %v6237_v60  ;;  %3696 = vmatprep.mubr.f32.mxu0 %v6238_v33  ;;  %v6263_v60 = vand.u32 4294901760, %v4987_v44 }
  0xd2   :  { %3800 = vmatprep.mubr.f32.mxu1 %v6239_v50 }
  0xd4   :  { %3697 = vmatmul.mubr.f32.gmra.mxu0 %v6240_v3  ;;  %v6264_v3 = vld [vmem:[#allocation14_spill] sm:$0xff] }
  0xd5   :  { %3801 = vmatmul.mubr.f32.gmra.mxu1 %v6241_v24  ;;  %3699 = vmatprep.mubr.f32.mxu0 %v6242_v4 }
  0xd6   :  { %3803 = vmatprep.mubr.f32.mxu1 %v6243_v51 }
  0xd8   :  { %3700 = vmatmul.mubr.f32.gmra.mxu0 %v6244_v14 }
  0xd9   :  { %3804 = vmatmul.mubr.f32.gmra.mxu1 %v6245_v38  ;;  %3702 = vmatprep.mubr.f32.mxu0 %v6246_v27  ;;  %v6266_v27 = vld [vmem:[#allocation22_spill] sm:$0xff] }
  0xda   :  { %3806 = vmatprep.mubr.f32.mxu1 %v6247_v39 }
  0xdc   :  { %3703 = vmatmul.mubr.f32.gmra.mxu0 %v6248_v18 }
  0xdd   :  { %3807 = vmatmul.mubr.f32.gmra.mxu1 %v6249_v58  ;;  %3705 = vmatprep.mubr.f32.mxu0 %v6250_v5  ;;  %v6268_v5 = vld [vmem:[#allocation30_spill] sm:$0xff] }
  0xde   :  { %3809 = vmatprep.mubr.f32.mxu1 %v6251_v34 }
  0xe0   :  { %3706 = vmatmul.mubr.f32.gmra.mxu0 %v4916_v62  ;;  %v6260_v62 = vand.u32 4294901760, %v4961_v36 }
  0xe1   :  { %3810 = vmatmul.mubr.f32.gmra.mxu1 %v6252_v26  ;;  %3708 = vmatprep.mubr.f32.mxu0 %v6253_v13  ;;  %v6269_v26 = vld [vmem:[#allocation32_spill] sm:$0xff] }
  0xe2   :  { %3812 = vmatprep.mubr.f32.mxu1 %v6254_v45 }
  0xe4   :  { %v3424_v15 = vpop.f32.mrf.mxu0  ;;  %3709 = vmatmul.mubr.f32.gmra.mxu0 %v4954_v43  ;;  %v6262_v43 = vld [vmem:[#allocation12_spill] sm:$0xff] }
  0xe5   :  { %3813 = vmatmul.mubr.f32.gmra.mxu1 %v6255_v56  ;;  %3711 = vmatprep.mubr.f32.mxu0 %v4961_v36  ;;  %v6270_v56 = vld [vmem:[#allocation34_spill] sm:$0xff] }
  0xe6   :  { %v166_v9 = vpop.f32.mrf.mxu0  ;;  %3815 = vmatprep.mubr.f32.mxu1 %v6256_v53  ;;  %v6271_v53 = vld [vmem:[#allocation36_spill] sm:$0xff] }
  0xe8   :  { %v3427_v49 = vpop.f32.mrf.mxu0  ;;  %3712 = vmatmul.mubr.f32.gmra.mxu0 %v4977_v63  ;;  %v6265_v63 = vld [vmem:[#allocation19_spill] sm:$0xff] }
  0xe9   :  { %3816 = vmatmul.mubr.f32.gmra.mxu1 %v6257_v21  ;;  %3714 = vmatprep.mubr.f32.mxu0 %v4987_v44 }
  0xea   :  { %v186_v61 = vpop.f32.mrf.mxu0  ;;  %3818 = vmatprep.mubr.f32.mxu1 %v6258_v55 }
  0xec   :  { %v3430_v48 = vpop.f32.mrf.mxu0  ;;  %3715 = vmatmul.mubr.f32.gmra.mxu0 %v5000_v31  ;;  %v6267_v31 = vld [vmem:[#allocation28_spill] sm:$0xff] }
  0xed   :  { %v3534_v10 = vpop.f32.mrf.mxu1  ;;  %3819 = vmatmul.mubr.f32.gmra.mxu1 %v6259_v7  ;;  %3717 = vmatprep.mubr.f32.mxu0 %v5010_v25 }
  0xee   :  { %v5252_v40 = vadd.f32 %v3534_v10, %v3424_v15  ;;  %v206_v29 = vpop.f32.mrf.mxu0  ;;  %3821 = vmatprep.mubr.f32.mxu1 %v6260_v62  ;;  %v6272_v10 = vld [vmem:[#allocation38_spill] sm:$0xff] }
  0xef   :  { %v827_v8 = vpop.f32.mrf.mxu1 }
  0xf0   :  { %v5256_v59 = vadd.f32 %v827_v8, %v166_v9  ;;  %v3433_v11 = vpop.f32.mrf.mxu0  ;;  %3718 = vmatmul.mubr.f32.gmra.mxu0 %v5018_v12 }
  0xf1   :  { %v3537_v1 = vpop.f32.mrf.mxu1  ;;  %3822 = vmatmul.mubr.f32.gmra.mxu1 %v6261_v30  ;;  %3862 = vmatprep.mubr.f32.mxu0 %v6262_v43 }
  0xf2   :  { %v5262_v6 = vadd.f32 %v3537_v1, %v3427_v49  ;;  %v226_v16 = vpop.f32.mrf.mxu0  ;;  %3824 = vmatprep.mubr.f32.mxu1 %v6263_v60  ;;  %v6275_v60 = vld [vmem:[#allocation42_spill] sm:$0xff] }
  0xf3   :  { %v839_v36 = vpop.f32.mrf.mxu1 }
  0xf4   :  { %v5266_v33 = vadd.f32 %v839_v36, %v186_v61  ;;  %v3436_v50 = vpop.f32.mrf.mxu0  ;;  %3863 = vmatmul.mubr.f32.vlgmr.msra.gmra.mxu0 %v6264_v3 }
  0xf5   :  { %v3540_v24 = vpop.f32.mrf.mxu1  ;;  %3825 = vmatmul.mubr.f32.gmra.mxu1 %v652_v22  ;;  %3865 = vmatprep.mubr.f32.mxu0 %v6265_v63 }
  0xf6   :  { %v5272_v4 = vadd.f32 %v3540_v24, %v3430_v48  ;;  %v246_v51 = vpop.f32.mrf.mxu0  ;;  %3827 = vmatprep.mubr.f32.mxu1 %v662_v54 }
  0xf7   :  { %v851_v44 = vpop.f32.mrf.mxu1 }
  0xf8   :  { %v5276_v14 = vadd.f32 %v851_v44, %v206_v29  ;;  %v3439_v38 = vpop.f32.mrf.mxu0  ;;  %3866 = vmatmul.mubr.f32.gmra.mxu0 %v6266_v27  ;;  %v6273_v29 = vld [vmem:[#allocation39_spill] sm:$0xff] }
  0xf9   :  { %v3543_v39 = vpop.f32.mrf.mxu1  ;;  %3828 = vmatmul.mubr.f32.gmra.mxu1 %v672_v19  ;;  %3868 = vmatprep.mubr.f32.mxu0 %v6267_v31 }
  0xfa   :  { %v5282_v22 = vadd.f32 %v3543_v39, %v3433_v11  ;;  %v266_v18 = vpop.f32.mrf.mxu0  ;;  %3972 = vmatprep.mubr.f32.mxu1 %v6262_v43  ;;  %v6274_v43 = vld [vmem:[#allocation41_spill] sm:$0xff] }
  0xfb   :  { %v863_v58 = vpop.f32.mrf.mxu1 }
  0xfc   :  { %v5285_v25 = vadd.f32 %v863_v58, %v226_v16  ;;  %v3442_v54 = vpop.f32.mrf.mxu0  ;;  %3869 = vmatmul.mubr.f32.gmra.mxu0 %v6268_v5 }
  0xfd   :  { %v3546_v34 = vpop.f32.mrf.mxu1  ;;  %3973 = vmatmul.mubr.f32.vlgmr.msra.gmra.mxu1 %v6264_v3  ;;  %3871 = vmatprep.mubr.f32.mxu0 %v6269_v26 }
  0xfe   :  { %v5290_v12 = vadd.f32 %v3546_v34, %v3436_v50  ;;  %v286_v19 = vpop.f32.mrf.mxu0  ;;  %3975 = vmatprep.mubr.f32.mxu1 %v6265_v63  ;;  %v6279_v34 = vld [vmem:[#allocation49_spill] sm:$0xff] }
  0xff   :  { %v875_v13 = vpop.f32.mrf.mxu1 }
 0x100   :  { %v5293_v45 = vadd.f32 %v875_v13, %v246_v51  ;;  %v3445_v15 = vpop.f32.mrf.mxu0  ;;  %3872 = vmatmul.mubr.f32.gmra.mxu0 %v6270_v56  ;;  %v6276_v51 = vld [vmem:[#allocation43_spill] sm:$0xff] }
 0x101   :  { %v3549_v9 = vpop.f32.mrf.mxu1  ;;  %3976 = vmatmul.mubr.f32.gmra.mxu1 %v6266_v27  ;;  %3874 = vmatprep.mubr.f32.mxu0 %v6271_v53 }
 0x102   :  { %v5298_v49 = vadd.f32 %v3549_v9, %v3439_v38  ;;  %v306_v21 = vpop.f32.mrf.mxu0  ;;  %3978 = vmatprep.mubr.f32.mxu1 %v6267_v31  ;;  %v6277_v38 = vld [vmem:[#allocation45_spill] sm:$0xff]  ;;  %v6280_v9 = vld [vmem:[#allocation50_spill] sm:$0xff] }
 0x103   :  { %v887_v61 = vpop.f32.mrf.mxu1 }
 0x104   :  { %v5301_v55 = vadd.f32 %v887_v61, %v266_v18  ;;  %v3448_v48 = vpop.f32.mrf.mxu0  ;;  %3875 = vmatmul.mubr.f32.gmra.mxu0 %v6272_v10 }
 0x105   :  { %v3552_v7 = vpop.f32.mrf.mxu1  ;;  %3979 = vmatmul.mubr.f32.gmra.mxu1 %v6268_v5  ;;  %3877 = vmatprep.mubr.f32.mxu0 %v6273_v29 }
 0x106   :  { %v5306_v62 = vadd.f32 %v3552_v7, %v3442_v54  ;;  %v326_v8 = vpop.f32.mrf.mxu0  ;;  %3981 = vmatprep.mubr.f32.mxu1 %v6269_v26  ;;  %v6278_v54 = vld [vmem:[#allocation47_spill] sm:$0xff] }
 0x107   :  { %v899_v11 = vpop.f32.mrf.mxu1 }
 0x108   :  { %v5309_v1 = vadd.f32 %v899_v11, %v286_v19  ;;  %v3451_v30 = vpop.f32.mrf.mxu0  ;;  %3878 = vmatmul.mubr.f32.gmra.mxu0 %v6274_v43 }
 0x109   :  { %v3555_v16 = vpop.f32.mrf.mxu1  ;;  %3982 = vmatmul.mubr.f32.gmra.mxu1 %v6270_v56  ;;  %3880 = vmatprep.mubr.f32.mxu0 %v6275_v60 }
 0x10a   :  { %v5314_v36 = vadd.f32 %v3555_v16, %v3445_v15  ;;  %v346_v50 = vpop.f32.mrf.mxu0  ;;  %3984 = vmatprep.mubr.f32.mxu1 %v6271_v53 }
 0x10b   :  { %v911_v3 = vpop.f32.mrf.mxu1 }
 0x10c   :  { %v5317_v24 = vadd.f32 %v911_v3, %v306_v21  ;;  %v3454_v63 = vpop.f32.mrf.mxu0  ;;  %3881 = vmatmul.mubr.f32.gmra.mxu0 %v6276_v51  ;;  %v6281_v21 = vld [vmem:[#allocation51_spill] sm:$0xff] }
 0x10d   :  { %v3558_v44 = vpop.f32.mrf.mxu1  ;;  %3985 = vmatmul.mubr.f32.gmra.mxu1 %v6272_v10  ;;  %3883 = vmatprep.mubr.f32.mxu0 %v6277_v38 }
 0x10e   :  { %v5322_v27 = vadd.f32 %v3558_v44, %v3448_v48  ;;  %v366_v39 = vpop.f32.mrf.mxu0  ;;  %3987 = vmatprep.mubr.f32.mxu1 %v6273_v29  ;;  %v6285_v44 = vld [vmem:[#allocation57_spill] sm:$0xff] }
 0x10f   :  { %v923_v31 = vpop.f32.mrf.mxu1 }
 0x110   :  { %v5325_v18 = vadd.f32 %v923_v31, %v326_v8  ;;  %v3457_v58 = vpop.f32.mrf.mxu0  ;;  %3884 = vmatmul.mubr.f32.gmra.mxu0 %v6278_v54  ;;  %v6282_v8 = vld [vmem:[#allocation52_spill] sm:$0xff] }
 0x111   :  { %v3561_v5 = vpop.f32.mrf.mxu1  ;;  %3988 = vmatmul.mubr.f32.gmra.mxu1 %v6274_v43  ;;  %3886 = vmatprep.mubr.f32.mxu0 %v6279_v34 }
 0x112   :  { %v5330_v26 = vadd.f32 %v3561_v5, %v3451_v30  ;;  %v386_v19 = vpop.f32.mrf.mxu0  ;;  %3990 = vmatprep.mubr.f32.mxu1 %v6275_v60  ;;  %v6283_v30 = vld [vmem:[#allocation54_spill] sm:$0xff]  ;;  %v6286_v5 = vld [vmem:[#allocation59_spill] sm:$0xff] }
 0x113   :  { %v935_v13 = vpop.f32.mrf.mxu1 }
 0x114   :  { %v5333_v15 = vadd.f32 %v935_v13, %v346_v50  ;;  %v3460_v56 = vpop.f32.mrf.mxu0  ;;  %3887 = vmatmul.mubr.f32.gmra.mxu0 %v6280_v9 }
 0x115   :  { %v3564_v53 = vpop.f32.mrf.mxu1  ;;  %3991 = vmatmul.mubr.f32.gmra.mxu1 %v6276_v51  ;;  %3889 = vmatprep.mubr.f32.mxu0 %v6281_v21 }
 0x116   :  { %v5338_v61 = vadd.f32 %v3564_v53, %v3454_v63  ;;  %v406_v48 = vpop.f32.mrf.mxu0  ;;  %3993 = vmatprep.mubr.f32.mxu1 %v6277_v38  ;;  %v6284_v63 = vld [vmem:[#allocation56_spill] sm:$0xff] }
 0x117   :  { %v947_v10 = vpop.f32.mrf.mxu1 }
 0x118   :  { %v5341_v7 = vadd.f32 %v947_v10, %v366_v39  ;;  %v3463_v29 = vpop.f32.mrf.mxu0  ;;  %3890 = vmatmul.mubr.f32.gmra.mxu0 %v6282_v8  ;;  %v6288_v10 = vld [vmem:[#allocation62_spill] sm:$0xff] }
 0x119   :  { %v3567_v11 = vpop.f32.mrf.mxu1  ;;  %3994 = vmatmul.mubr.f32.gmra.mxu1 %v6278_v54  ;;  %3892 = vmatprep.mubr.f32.mxu0 %v6283_v30 }
 0x11a   :  { %v5346_v43 = vadd.f32 %v3567_v11, %v3457_v58  ;;  %v426_v16 = vpop.f32.mrf.mxu0  ;;  %3996 = vmatprep.mubr.f32.mxu1 %v6279_v34  ;;  %v6289_v11 = vld [vmem:[#allocation63_spill] sm:$0xff] }
 0x11b   :  { %v959_v60 = vpop.f32.mrf.mxu1 }
 0x11c   :  { %v5349_v50 = vadd.f32 %v959_v60, %v386_v19  ;;  %v3466_v3 = vpop.f32.mrf.mxu0  ;;  %3893 = vmatmul.mubr.f32.gmra.mxu0 %v6284_v63  ;;  %v6287_v19 = vld [vmem:[#allocation60_spill] sm:$0xff] }
 0x11d   :  { %v3570_v51 = vpop.f32.mrf.mxu1  ;;  %3997 = vmatmul.mubr.f32.gmra.mxu1 %v6280_v9  ;;  %3895 = vmatprep.mubr.f32.mxu0 %v6285_v44 }
 0x11e   :  { %v5354_v38 = vadd.f32 %v3570_v51, %v3460_v56  ;;  %v446_v39 = vpop.f32.mrf.mxu0  ;;  %3999 = vmatprep.mubr.f32.mxu1 %v6281_v21 }
 0x11f   :  { %v971_v31 = vpop.f32.mrf.mxu1 }
 0x120   :  { %v5357_v58 = vadd.f32 %v971_v31, %v406_v48  ;;  %v3469_v54 = vpop.f32.mrf.mxu0  ;;  %3896 = vmatmul.mubr.f32.gmra.mxu0 %v6286_v5  ;;  %v6292_v31 = vld [vmem:[#allocation65_spill] sm:$0xff] }
 0x121   :  { %v3573_v34 = vpop.f32.mrf.mxu1  ;;  %4000 = vmatmul.mubr.f32.gmra.mxu1 %v6282_v8  ;;  %3898 = vmatprep.mubr.f32.mxu0 %v6287_v19 }
 0x122   :  { %v5362_v13 = vadd.f32 %v3573_v34, %v3463_v29  ;;  %v466_v9 = vpop.f32.mrf.mxu0  ;;  %4002 = vmatprep.mubr.f32.mxu1 %v6283_v30  ;;  %v6293_v34 = vld [vmem:[#allocation66_spill] sm:$0xff] }
 0x123   :  { %v983_v56 = vpop.f32.mrf.mxu1 }
 0x124   :  { %v5365_v53 = vadd.f32 %v983_v56, %v426_v16  ;;  %v3472_v21 = vpop.f32.mrf.mxu0  ;;  %3899 = vmatmul.mubr.f32.gmra.mxu0 %v6288_v10 }
 0x125   :  { %v3576_v48 = vpop.f32.mrf.mxu1  ;;  %4003 = vmatmul.mubr.f32.gmra.mxu1 %v6284_v63  ;;  %3901 = vmatprep.mubr.f32.mxu0 %v6289_v11 }
 0x126   :  { %v5370_v60 = vadd.f32 %v3576_v48, %v3466_v3  ;;  %v486_v8 = vpop.f32.mrf.mxu0  ;;  %4005 = vmatprep.mubr.f32.mxu1 %v6285_v44 }
 0x127   :  { %v995_v29 = vpop.f32.mrf.mxu1 }
 0x128   :  { %6290 = vst [vmem:[#allocation25_spill] sm:$0xff] %v5370_v60  ;;  %v5373_v51 = vadd.f32 %v995_v29, %v446_v39  ;;  %v3475_v30 = vpop.f32.mrf.mxu0  ;;  %3902 = vmatmul.mubr.f32.gmra.mxu0 %v6292_v31  ;;  %v6296_v60 = vld [vmem:[#allocation68_spill] sm:$0xff]  ;;  %v6297_v29 = vld [vmem:[#allocation70_spill] sm:$0xff] }
 0x129   :  { %v3579_v16 = vpop.f32.mrf.mxu1  ;;  %4006 = vmatmul.mubr.f32.gmra.mxu1 %v6286_v5  ;;  %3904 = vmatprep.mubr.f32.mxu0 %v6293_v34 }
 0x12a   :  { %6291 = vst [vmem:[#allocation2_spill] sm:$0xff] %v5373_v51  ;;  %v5378_v56 = vadd.f32 %v3579_v16, %v3469_v54  ;;  %v506_v63 = vpop.f32.mrf.mxu0  ;;  %4008 = vmatprep.mubr.f32.mxu1 %v6287_v19 }
 0x12b   :  { %v1007_v3 = vpop.f32.mrf.mxu1 }
 0x12c   :  { %6294 = vst [vmem:[#allocation15_spill] sm:$0xff] %v5378_v56  ;;  %v5381_v48 = vadd.f32 %v1007_v3, %v466_v9  ;;  %v3478_v44 = vpop.f32.mrf.mxu0  ;;  %3905 = vmatmul.mubr.f32.gmra.mxu0 %v6296_v60  ;;  %v6300_v56 = vld [vmem:[#allocation71_spill] sm:$0xff]  ;;  %v6301_v3 = vld [vmem:[#allocation74_spill] sm:$0xff] }
 0x12d   :  { %v3582_v39 = vpop.f32.mrf.mxu1  ;;  %4009 = vmatmul.mubr.f32.gmra.mxu1 %v6288_v10  ;;  %3907 = vmatprep.mubr.f32.mxu0 %v6297_v29 }
 0x12e   :  { %6295 = vst [vmem:[#allocation17_spill] sm:$0xff] %v5381_v48  ;;  %v5386_v51 = vadd.f32 %v3582_v39, %v3472_v21  ;;  %v526_v5 = vpop.f32.mrf.mxu0  ;;  %4011 = vmatprep.mubr.f32.mxu1 %v6289_v11 }
 0x12f   :  { %v1019_v54 = vpop.f32.mrf.mxu1 }
 0x130   :  { %6298 = vst [vmem:[#allocation24_spill] sm:$0xff] %v5386_v51  ;;  %v5389_v16 = vadd.f32 %v1019_v54, %v486_v8  ;;  %v3481_v19 = vpop.f32.mrf.mxu0  ;;  %3908 = vmatmul.mubr.f32.gmra.mxu0 %v6300_v56  ;;  %v6304_v51 = vld [vmem:[#allocation76_spill] sm:$0xff]  ;;  %v6305_v54 = vld [vmem:[#allocation77_spill] sm:$0xff] }
 0x131   :  { %v3585_v9 = vpop.f32.mrf.mxu1  ;;  %4012 = vmatmul.mubr.f32.gmra.mxu1 %v6292_v31  ;;  %3910 = vmatprep.mubr.f32.mxu0 %v6301_v3 }
 0x132   :  { %6299 = vst [vmem:[#allocation3_spill] sm:$0xff] %v5389_v16  ;;  %v5394_v48 = vadd.f32 %v3585_v9, %v3475_v30  ;;  %v546_v10 = vpop.f32.mrf.mxu0  ;;  %4014 = vmatprep.mubr.f32.mxu1 %v6293_v34 }
 0x133   :  { %v1031_v21 = vpop.f32.mrf.mxu1 }
 0x134   :  { %6302 = vst [vmem:[#allocation27_spill] sm:$0xff] %v5394_v48  ;;  %v5397_v39 = vadd.f32 %v1031_v21, %v506_v63  ;;  %v3484_v11 = vpop.f32.mrf.mxu0  ;;  %3911 = vmatmul.mubr.f32.gmra.mxu0 %v6304_v51  ;;  %v6306_v48 = vld [vmem:[#allocation79_spill] sm:$0xff]  ;;  %v6307_v21 = vld [vmem:[#allocation82_spill] sm:$0xff] }
 0x135   :  { %v3588_v8 = vpop.f32.mrf.mxu1  ;;  %4015 = vmatmul.mubr.f32.gmra.mxu1 %v6296_v60  ;;  %3913 = vmatprep.mubr.f32.mxu0 %v6305_v54 }
 0x136   :  { %6303 = vst [vmem:[#allocation31_spill] sm:$0xff] %v5397_v39  ;;  %v5402_v16 = vadd.f32 %v3588_v8, %v3478_v44  ;;  %v566_v31 = vpop.f32.mrf.mxu0  ;;  %4017 = vmatprep.mubr.f32.mxu1 %v6297_v29 }
 0x137   :  { %v1043_v30 = vpop.f32.mrf.mxu1 }
 0x138   :  { %v5405_v9 = vadd.f32 %v1043_v30, %v526_v5  ;;  %v3487_v34 = vpop.f32.mrf.mxu0  ;;  %3914 = vmatmul.mubr.f32.gmra.mxu0 %v6306_v48 }
 0x139   :  { %v3591_v63 = vpop.f32.mrf.mxu1  ;;  %4018 = vmatmul.mubr.f32.gmra.mxu1 %v6300_v56  ;;  %3916 = vmatprep.mubr.f32.mxu0 %v6307_v21 }
 0x13a   :  { %v5410_v39 = vadd.f32 %v3591_v63, %v3481_v19  ;;  %v586_v60 = vpop.f32.mrf.mxu0  ;;  %4020 = vmatprep.mubr.f32.mxu1 %v6301_v3 }
 0x13b   :  { %v1055_v44 = vpop.f32.mrf.mxu1 }
 0x13c   :  { %v5413_v8 = vadd.f32 %v1055_v44, %v546_v10  ;;  %v3490_v29 = vpop.f32.mrf.mxu0  ;;  %3917 = vmatmul.mubr.f32.gmra.mxu0 %v4804_v2 }
 0x13d   :  { %v3594_v5 = vpop.f32.mrf.mxu1  ;;  %4021 = vmatmul.mubr.f32.gmra.mxu1 %v6304_v51  ;;  %3919 = vmatprep.mubr.f32.mxu0 %v4814_v41 }
 0x13e   :  { %v5418_v30 = vadd.f32 %v3594_v5, %v3484_v11  ;;  %v606_v56 = vpop.f32.mrf.mxu0  ;;  %4023 = vmatprep.mubr.f32.mxu1 %v6305_v54 }
 0x13f   :  { %v1067_v19 = vpop.f32.mrf.mxu1 }
 0x140   :  { %v5421_v63 = vadd.f32 %v1067_v19, %v566_v31  ;;  %v3493_v3 = vpop.f32.mrf.mxu0  ;;  %3920 = vmatmul.mubr.f32.gmra.mxu0 %v4836_v0 }
 0x141   :  { %v3597_v10 = vpop.f32.mrf.mxu1  ;;  %4024 = vmatmul.mubr.f32.gmra.mxu1 %v6306_v48  ;;  %3922 = vmatprep.mubr.f32.mxu0 %v4847_v23 }
 0x142   :  { %v5426_v44 = vadd.f32 %v3597_v10, %v3487_v34  ;;  %v626_v51 = vpop.f32.mrf.mxu0  ;;  %4026 = vmatprep.mubr.f32.mxu1 %v6307_v21 }
 0x143   :  { %v1079_v11 = vpop.f32.mrf.mxu1 }
 0x144   :  { %v5429_v5 = vadd.f32 %v1079_v11, %v586_v60  ;;  %v3496_v54 = vpop.f32.mrf.mxu0  ;;  %3923 = vmatmul.mubr.f32.gmra.mxu0 %v4857_v28 }
 0x145   :  { %v3600_v31 = vpop.f32.mrf.mxu1  ;;  %4027 = vmatmul.mubr.f32.gmra.mxu1 %v4804_v2  ;;  %3925 = vmatprep.mubr.f32.mxu0 %v4865_v20 }
 0x146   :  { %v5434_v19 = vadd.f32 %v3600_v31, %v3490_v29  ;;  %v646_v48 = vpop.f32.mrf.mxu0  ;;  %4029 = vmatprep.mubr.f32.mxu1 %v4814_v41 }
 0x147   :  { %v1091_v34 = vpop.f32.mrf.mxu1 }
 0x148   :  { %v5437_v10 = vadd.f32 %v1091_v34, %v606_v56  ;;  %v3499_v21 = vpop.f32.mrf.mxu0  ;;  %3926 = vmatmul.mubr.f32.gmra.mxu0 %v4887_v46 }
 0x149   :  { %v3603_v60 = vpop.f32.mrf.mxu1  ;;  %4030 = vmatmul.mubr.f32.gmra.mxu1 %v4836_v0  ;;  %3928 = vmatprep.mubr.f32.mxu0 %v4904_v57 }
 0x14a   :  { %v5442_v11 = vadd.f32 %v3603_v60, %v3493_v3  ;;  %v666_v2 = vpop.f32.mrf.mxu0  ;;  %4032 = vmatprep.mubr.f32.mxu1 %v4847_v23 }
 0x14b   :  { %v1103_v29 = vpop.f32.mrf.mxu1 }
 0x14c   :  { %v5445_v31 = vadd.f32 %v1103_v29, %v626_v51  ;;  %v3644_v41 = vpop.f32.mrf.mxu0  ;;  %3929 = vmatmul.mubr.f32.gmra.mxu0 %v4924_v47 }
 0x14d   :  { %v3606_v56 = vpop.f32.mrf.mxu1  ;;  %v1245_v34 = vadd.f32 %v3644_v41, %v5252_v40  ;;  %4033 = vmatmul.mubr.f32.gmra.mxu1 %v4857_v28  ;;  %3931 = vmatprep.mubr.f32.mxu0 %v4934_v37 }
 0x14e   :  { %6308 = vst [vmem:[#allocation4_spill] sm:$0xff] %v5445_v31  ;;  %v5451_v0 = vadd.f32 %v3606_v56, %v3496_v54  ;;  %v1237_v3 = vpop.f32.mrf.mxu0  ;;  %4035 = vmatprep.mubr.f32.mxu1 %v4865_v20 }
 0x14f   :  { %v1115_v60 = vpop.f32.mrf.mxu1  ;;  %v1238_v23 = vadd.f32 %v1237_v3, %v5256_v59 }
 0x150   :  { %v5455_v51 = vadd.f32 %v1115_v60, %v646_v48  ;;  %v3647_v29 = vpop.f32.mrf.mxu0  ;;  %3932 = vmatmul.mubr.f32.gmra.mxu0 %v4956_v35 }
 0x151   :  { %v3609_v31 = vpop.f32.mrf.mxu1  ;;  %v1259_v40 = vadd.f32 %v3647_v29, %v5262_v6  ;;  %4036 = vmatmul.mubr.f32.gmra.mxu1 %v4887_v46  ;;  %3934 = vmatprep.mubr.f32.mxu0 %v4963_v32 }
 0x152   :  { %v5461_v28 = vadd.f32 %v3609_v31, %v3499_v21  ;;  %v1251_v54 = vpop.f32.mrf.mxu0  ;;  %4038 = vmatprep.mubr.f32.mxu1 %v4904_v57 }
 0x153   :  { %v1127_v20 = vpop.f32.mrf.mxu1  ;;  %v1252_v59 = vadd.f32 %v1251_v54, %v5266_v33 }
 0x154   :  { %v5465_v48 = vadd.f32 %v1127_v20, %v666_v2  ;;  %v3650_v41 = vpop.f32.mrf.mxu0  ;;  %3935 = vmatmul.mubr.f32.gmra.mxu0 %v4979_v17 }
 0x155   :  { %v1273_v56 = vadd.f32 %v3650_v41, %v5272_v4  ;;  %v3754_v6 = vpop.f32.mrf.mxu1  ;;  %4039 = vmatmul.mubr.f32.gmra.mxu1 %v4924_v47  ;;  %3937 = vmatprep.mubr.f32.mxu0 %v4989_v52 }
 0x156   :  { %v5471_v46 = vadd.f32 %v3754_v6, %v1245_v34  ;;  %v1265_v21 = vpop.f32.mrf.mxu0  ;;  %4041 = vmatprep.mubr.f32.mxu1 %v4934_v37 }
 0x157   :  { %v1266_v57 = vadd.f32 %v1265_v21, %v5276_v14  ;;  %v1683_v33 = vpop.f32.mrf.mxu1 }
 0x158   :  { %v5475_v2 = vadd.f32 %v1683_v33, %v1238_v23  ;;  %v3653_v31 = vpop.f32.mrf.mxu0  ;;  %3938 = vmatmul.mubr.f32.gmra.mxu0 %v5002_v42 }
 0x159   :  { %v1287_v4 = vadd.f32 %v3653_v31, %v5282_v22  ;;  %v3757_v3 = vpop.f32.mrf.mxu1  ;;  %4042 = vmatmul.mubr.f32.gmra.mxu1 %v4956_v35 }
 0x15a   :  { %v5480_v47 = vadd.f32 %v3757_v3, %v1259_v40  ;;  %v1279_v34 = vpop.f32.mrf.mxu0  ;;  %4044 = vmatprep.mubr.f32.mxu1 %v4963_v32 }
 0x15b   :  { %v1280_v37 = vadd.f32 %v1279_v34, %v5285_v25  ;;  %v1699_v60 = vpop.f32.mrf.mxu1 }
 0x15c   :  { %v5484_v14 = vadd.f32 %v1699_v60, %v1252_v59  ;;  %v3656_v23 = vpop.f32.mrf.mxu0 }
 0x15d   :  { %v1301_v29 = vadd.f32 %v3656_v23, %v5290_v12  ;;  %v3760_v54 = vpop.f32.mrf.mxu1  ;;  %4045 = vmatmul.mubr.f32.gmra.mxu1 %v4979_v17 }
 0x15e   :  { %v5488_v22 = vadd.f32 %v3760_v54, %v1273_v56  ;;  %v1293_v20 = vpop.f32.mrf.mxu0  ;;  %4047 = vmatprep.mubr.f32.mxu1 %v4989_v52 }
 0x15f   :  { %v1294_v35 = vadd.f32 %v1293_v20, %v5293_v45  ;;  %v1715_v40 = vpop.f32.mrf.mxu1 }
 0x160   :  { %v5492_v32 = vadd.f32 %v1715_v40, %v1266_v57  ;;  %v3659_v25 = vpop.f32.mrf.mxu0 }
 0x161   :  { %v1315_v59 = vadd.f32 %v3659_v25, %v5298_v49  ;;  %v3763_v41 = vpop.f32.mrf.mxu1  ;;  %4048 = vmatmul.mubr.f32.gmra.mxu1 %v5002_v42 }
 0x162   :  { %v5496_v12 = vadd.f32 %v3763_v41, %v1287_v4  ;;  %v1307_v6 = vpop.f32.mrf.mxu0 }
 0x163   :  { %v1308_v17 = vadd.f32 %v1307_v6, %v5301_v55  ;;  %v1731_v56 = vpop.f32.mrf.mxu1 }
 0x164   :  { %v5499_v21 = vadd.f32 %v1731_v56, %v1280_v37  ;;  %v3662_v52 = vpop.f32.mrf.mxu0 }
 0x165   :  { %v1329_v45 = vadd.f32 %v3662_v52, %v5306_v62  ;;  %v3766_v33 = vpop.f32.mrf.mxu1 }
 0x166   :  { %v5502_v57 = vadd.f32 %v3766_v33, %v1301_v29  ;;  %v1321_v31 = vpop.f32.mrf.mxu0 }
 0x167   :  { %v1322_v49 = vadd.f32 %v1321_v31, %v5309_v1  ;;  %v1747_v3 = vpop.f32.mrf.mxu1 }
 0x168   :  { %v5505_v34 = vadd.f32 %v1747_v3, %v1294_v35  ;;  %v3665_v42 = vpop.f32.mrf.mxu0 }
 0x169   :  { %v1343_v4 = vadd.f32 %v3665_v42, %v5314_v36  ;;  %v3769_v60 = vpop.f32.mrf.mxu1 }
 0x16a   :  { %v5508_v55 = vadd.f32 %v3769_v60, %v1315_v59  ;;  %v1335_v37 = vpop.f32.mrf.mxu0 }
 0x16b   :  { %v1336_v23 = vadd.f32 %v1335_v37, %v5317_v24  ;;  %v1763_v54 = vpop.f32.mrf.mxu1 }
 0x16c   :  { %v5511_v62 = vadd.f32 %v1763_v54, %v1308_v17  ;;  %v3668_v29 = vpop.f32.mrf.mxu0 }
 0x16d   :  { %v1357_v20 = vadd.f32 %v3668_v29, %v5322_v27  ;;  %v3772_v40 = vpop.f32.mrf.mxu1 }
 0x16e   :  { %v5514_v1 = vadd.f32 %v3772_v40, %v1329_v45  ;;  %v1349_v35 = vpop.f32.mrf.mxu0 }
 0x16f   :  { %v1350_v25 = vadd.f32 %v1349_v35, %v5325_v18  ;;  %v1779_v41 = vpop.f32.mrf.mxu1 }
 0x170   :  { %v5517_v36 = vadd.f32 %v1779_v41, %v1322_v49  ;;  %v3671_v59 = vpop.f32.mrf.mxu0 }
 0x171   :  { %v1371_v6 = vadd.f32 %v3671_v59, %v5330_v26  ;;  %v3775_v56 = vpop.f32.mrf.mxu1 }
 0x172   :  { %v5520_v24 = vadd.f32 %v3775_v56, %v1343_v4  ;;  %v1363_v17 = vpop.f32.mrf.mxu0 }
 0x173   :  { %v1364_v52 = vadd.f32 %v1363_v17, %v5333_v15  ;;  %v1795_v33 = vpop.f32.mrf.mxu1 }
 0x174   :  { %v5523_v27 = vadd.f32 %v1795_v33, %v1336_v23  ;;  %v3674_v45 = vpop.f32.mrf.mxu0 }
 0x175   :  { %v1385_v31 = vadd.f32 %v3674_v45, %v5338_v61  ;;  %v3778_v3 = vpop.f32.mrf.mxu1 }
 0x176   :  { %v5526_v18 = vadd.f32 %v3778_v3, %v1357_v20  ;;  %v1377_v49 = vpop.f32.mrf.mxu0 }
 0x177   :  { %v1378_v42 = vadd.f32 %v1377_v49, %v5341_v7  ;;  %v1811_v60 = vpop.f32.mrf.mxu1  ;;  %v6309_v49 = vld [vmem:[#allocation25_spill] sm:$0xff] }
 0x178   :  { %v5529_v26 = vadd.f32 %v1811_v60, %v1350_v25  ;;  %v3677_v4 = vpop.f32.mrf.mxu0 }
 0x179   :  { %v1399_v37 = vadd.f32 %v3677_v4, %v5346_v43  ;;  %v3781_v54 = vpop.f32.mrf.mxu1 }
 0x17a   :  { %v5532_v15 = vadd.f32 %v3781_v54, %v1371_v6  ;;  %v1391_v23 = vpop.f32.mrf.mxu0  ;;  %v6310_v54 = vld [vmem:[#allocation2_spill] sm:$0xff] }
 0x17b   :  { %v1392_v29 = vadd.f32 %v1391_v23, %v5349_v50  ;;  %v1827_v40 = vpop.f32.mrf.mxu1 }
 0x17c   :  { %v5535_v61 = vadd.f32 %v1827_v40, %v1364_v52  ;;  %v3680_v20 = vpop.f32.mrf.mxu0 }
 0x17d   :  { %v1413_v35 = vadd.f32 %v3680_v20, %v5354_v38  ;;  %v3784_v41 = vpop.f32.mrf.mxu1  ;;  %v6311_v20 = vld [vmem:[#allocation15_spill] sm:$0xff] }
 0x17e   :  { %v5538_v7 = vadd.f32 %v3784_v41, %v1385_v31  ;;  %v1405_v25 = vpop.f32.mrf.mxu0 }
 0x17f   :  { %v1406_v59 = vadd.f32 %v1405_v25, %v5357_v58  ;;  %v1843_v56 = vpop.f32.mrf.mxu1 }
 0x180   :  { %v5541_v43 = vadd.f32 %v1843_v56, %v1378_v42  ;;  %v3683_v6 = vpop.f32.mrf.mxu0  ;;  %v6313_v56 = vld [vmem:[#allocation17_spill] sm:$0xff] }
 0x181   :  { %v1427_v17 = vadd.f32 %v3683_v6, %v5362_v13  ;;  %v3787_v33 = vpop.f32.mrf.mxu1 }
 0x182   :  { %v5544_v50 = vadd.f32 %v3787_v33, %v1399_v37  ;;  %v1419_v52 = vpop.f32.mrf.mxu0 }
 0x183   :  { %v1420_v45 = vadd.f32 %v1419_v52, %v5365_v53  ;;  %v1859_v3 = vpop.f32.mrf.mxu1 }
 0x184   :  { %v5547_v38 = vadd.f32 %v1859_v3, %v1392_v29  ;;  %v3686_v31 = vpop.f32.mrf.mxu0  ;;  %v6315_v3 = vld [vmem:[#allocation24_spill] sm:$0xff] }
 0x185   :  { %v1441_v60 = vadd.f32 %v3686_v31, %v6309_v49  ;;  %v3790_v4 = vpop.f32.mrf.mxu1 }
 0x186   :  { %v5550_v58 = vadd.f32 %v3790_v4, %v1413_v35  ;;  %v1433_v42 = vpop.f32.mrf.mxu0 }
 0x187   :  { %v1434_v23 = vadd.f32 %v1433_v42, %v6310_v54  ;;  %v1875_v40 = vpop.f32.mrf.mxu1  ;;  %v6316_v42 = vld [vmem:[#allocation3_spill] sm:$0xff] }
 0x188   :  { %v5553_v13 = vadd.f32 %v1875_v40, %v1406_v59  ;;  %v3689_v37 = vpop.f32.mrf.mxu0 }
 0x189   :  { %v1455_v41 = vadd.f32 %v3689_v37, %v6311_v20  ;;  %v3793_v25 = vpop.f32.mrf.mxu1  ;;  %v6317_v20 = vld [vmem:[#allocation27_spill] sm:$0xff] }
 0x18a   :  { %v5556_v53 = vadd.f32 %v3793_v25, %v1427_v17  ;;  %v1447_v29 = vpop.f32.mrf.mxu0 }
 0x18b   :  { %v1448_v6 = vadd.f32 %v1447_v29, %v6313_v56  ;;  %v1891_v33 = vpop.f32.mrf.mxu1  ;;  %v6318_v56 = vld [vmem:[#allocation31_spill] sm:$0xff] }
 0x18c   :  { %6312 = vst [vmem:[#allocation40_spill] sm:$0xff] %v5556_v53  ;;  %v5559_v52 = vadd.f32 %v1891_v33, %v1420_v45  ;;  %v3692_v35 = vpop.f32.mrf.mxu0 }
 0x18d   :  { %v1469_v31 = vadd.f32 %v3692_v35, %v6315_v3  ;;  %v3796_v49 = vpop.f32.mrf.mxu1 }
 0x18e   :  { %6314 = vst [vmem:[#allocation5_spill] sm:$0xff] %v5559_v52  ;;  %v5562_v4 = vadd.f32 %v3796_v49, %v1441_v60  ;;  %v1461_v59 = vpop.f32.mrf.mxu0 }
 0x18f   :  { %v1462_v54 = vadd.f32 %v1461_v59, %v6316_v42  ;;  %v1907_v40 = vpop.f32.mrf.mxu1 }
 0x190   :  { %v5565_v37 = vadd.f32 %v1907_v40, %v1434_v23  ;;  %v3695_v17 = vpop.f32.mrf.mxu0 }
 0x191   :  { %v1483_v25 = vadd.f32 %v3695_v17, %v6317_v20  ;;  %v3799_v53 = vpop.f32.mrf.mxu1 }
 0x192   :  { %v5568_v29 = vadd.f32 %v3799_v53, %v1455_v41  ;;  %v1475_v45 = vpop.f32.mrf.mxu0 }
 0x193   :  { %v1476_v33 = vadd.f32 %v1475_v45, %v6318_v56  ;;  %v1923_v52 = vpop.f32.mrf.mxu1 }
 0x194   :  { %v5571_v35 = vadd.f32 %v1923_v52, %v1448_v6  ;;  %v3698_v60 = vpop.f32.mrf.mxu0 }
 0x195   :  { %v1497_v3 = vadd.f32 %v3698_v60, %v5402_v16  ;;  %v3802_v49 = vpop.f32.mrf.mxu1 }
 0x196   :  { %v5574_v59 = vadd.f32 %v3802_v49, %v1469_v31  ;;  %v1489_v23 = vpop.f32.mrf.mxu0 }
 0x197   :  { %v1490_v42 = vadd.f32 %v1489_v23, %v5405_v9  ;;  %v1939_v40 = vpop.f32.mrf.mxu1 }
 0x198   :  { %v5577_v17 = vadd.f32 %v1939_v40, %v1462_v54  ;;  %v3701_v41 = vpop.f32.mrf.mxu0 }
 0x199   :  { %v1511_v53 = vadd.f32 %v3701_v41, %v5410_v39  ;;  %v3805_v20 = vpop.f32.mrf.mxu1 }
 0x19a   :  { %v5580_v45 = vadd.f32 %v3805_v20, %v1483_v25  ;;  %v1503_v6 = vpop.f32.mrf.mxu0 }
 0x19b   :  { %v1504_v52 = vadd.f32 %v1503_v6, %v5413_v8  ;;  %v1955_v56 = vpop.f32.mrf.mxu1 }
 0x19c   :  { %v5583_v16 = vadd.f32 %v1955_v56, %v1476_v33  ;;  %v3704_v31 = vpop.f32.mrf.mxu0 }
 0x19d   :  { %v1525_v60 = vadd.f32 %v3704_v31, %v5418_v30  ;;  %v3808_v49 = vpop.f32.mrf.mxu1 }
 0x19e   :  { %v5586_v9 = vadd.f32 %v3808_v49, %v1497_v3  ;;  %v1517_v54 = vpop.f32.mrf.mxu0 }
 0x19f   :  { %v1518_v23 = vadd.f32 %v1517_v54, %v5421_v63  ;;  %v1971_v40 = vpop.f32.mrf.mxu1 }
 0x1a0   :  { %v5589_v39 = vadd.f32 %v1971_v40, %v1490_v42  ;;  %v3707_v25 = vpop.f32.mrf.mxu0 }
 0x1a1   :  { %v1539_v41 = vadd.f32 %v3707_v25, %v5426_v44  ;;  %v3811_v20 = vpop.f32.mrf.mxu1 }
 0x1a2   :  { %v5592_v8 = vadd.f32 %v3811_v20, %v1511_v53  ;;  %v1531_v33 = vpop.f32.mrf.mxu0 }
 0x1a3   :  { %v1532_v6 = vadd.f32 %v1531_v33, %v5429_v5  ;;  %v1987_v56 = vpop.f32.mrf.mxu1  ;;  %v6320_v33 = vld [vmem:[#allocation4_spill] sm:$0xff] }
 0x1a4   :  { %v5595_v30 = vadd.f32 %v1987_v56, %v1504_v52  ;;  %v3710_v3 = vpop.f32.mrf.mxu0 }
 0x1a5   :  { %v1553_v31 = vadd.f32 %v3710_v3, %v5434_v19  ;;  %v3814_v49 = vpop.f32.mrf.mxu1 }
 0x1a6   :  { %6319 = vst [vmem:[#allocation6_spill] sm:$0xff] %v5595_v30  ;;  %v5598_v63 = vadd.f32 %v3814_v49, %v1525_v60  ;;  %v1545_v42 = vpop.f32.mrf.mxu0 }
 0x1a7   :  { %v1546_v54 = vadd.f32 %v1545_v42, %v5437_v10  ;;  %v2003_v40 = vpop.f32.mrf.mxu1 }
 0x1a8   :  { %v5601_v44 = vadd.f32 %v2003_v40, %v1518_v23  ;;  %v3713_v53 = vpop.f32.mrf.mxu0 }
 0x1a9   :  { %v1567_v25 = vadd.f32 %v3713_v53, %v5442_v11  ;;  %v3817_v20 = vpop.f32.mrf.mxu1 }
 0x1aa   :  { %v5604_v5 = vadd.f32 %v3817_v20, %v1539_v41  ;;  %v1559_v52 = vpop.f32.mrf.mxu0 }
 0x1ab   :  { %v1560_v56 = vadd.f32 %v1559_v52, %v6320_v33  ;;  %v2019_v30 = vpop.f32.mrf.mxu1 }
 0x1ac   :  { %v5607_v19 = vadd.f32 %v2019_v30, %v1532_v6  ;;  %v3716_v60 = vpop.f32.mrf.mxu0 }
 0x1ad   :  { %v1581_v3 = vadd.f32 %v3716_v60, %v5451_v0  ;;  %v3820_v49 = vpop.f32.mrf.mxu1 }
 0x1ae   :  { %v5610_v10 = vadd.f32 %v3820_v49, %v1553_v31  ;;  %v1573_v23 = vpop.f32.mrf.mxu0 }
 0x1af   :  { %v1574_v42 = vadd.f32 %v1573_v23, %v5455_v51  ;;  %v2035_v40 = vpop.f32.mrf.mxu1 }
 0x1b0   :  { %v5613_v11 = vadd.f32 %v2035_v40, %v1546_v54  ;;  %v3719_v41 = vpop.f32.mrf.mxu0 }
 0x1b1   :  { %v1595_v53 = vadd.f32 %v3719_v41, %v5461_v28  ;;  %v3823_v20 = vpop.f32.mrf.mxu1 }
 0x1b2   :  { %v5616_v52 = vadd.f32 %v3823_v20, %v1567_v25  ;;  %v1587_v6 = vpop.f32.mrf.mxu0 }
 0x1b3   :  { %v1588_v30 = vadd.f32 %v1587_v6, %v5465_v48  ;;  %v2051_v33 = vpop.f32.mrf.mxu1 }
 0x1b4   :  { %v5619_v0 = vadd.f32 %v2051_v33, %v1560_v56  ;;  %v3864_v31 = vpop.f32.mrf.mxu0 }
 0x1b5   :  { %v3826_v60 = vpop.f32.mrf.mxu1  ;;  %v2217_v49 = vadd.f32 %v3864_v31, %v5471_v46 }
 0x1b6   :  { %6321 = vst [vmem:[#allocation44_spill] sm:$0xff] %v5619_v0  ;;  %v5622_v51 = vadd.f32 %v3826_v60, %v1581_v3  ;;  %v2210_v54 = vpop.f32.mrf.mxu0 }
 0x1b7   :  { %v2067_v23 = vpop.f32.mrf.mxu1  ;;  %v2211_v40 = vadd.f32 %v2210_v54, %v5475_v2 }
 0x1b8   :  { %v5625_v28 = vadd.f32 %v2067_v23, %v1574_v42  ;;  %v3867_v25 = vpop.f32.mrf.mxu0 }
 0x1b9   :  { %v3829_v41 = vpop.f32.mrf.mxu1  ;;  %v2229_v20 = vadd.f32 %v3867_v25, %v5480_v47 }
 0x1ba   :  { %v5628_v48 = vadd.f32 %v3829_v41, %v1595_v53  ;;  %v2222_v56 = vpop.f32.mrf.mxu0 }
 0x1bb   :  { %v2083_v6 = vpop.f32.mrf.mxu1  ;;  %v2223_v33 = vadd.f32 %v2222_v56, %v5484_v14 }
 0x1bc   :  { %6322 = vst [vmem:[#allocation7_spill] sm:$0xff] %v5628_v48  ;;  %v5631_v0 = vadd.f32 %v2083_v6, %v1588_v30  ;;  %v3870_v46 = vpop.f32.mrf.mxu0 }
 0x1bd   :  { %v2241_v3 = vadd.f32 %v3870_v46, %v5488_v22  ;;  %v3974_v31 = vpop.f32.mrf.mxu1 }
 0x1be   :  { %6323 = vst [vmem:[#allocation46_spill] sm:$0xff] %v5631_v0  ;;  %v5634_v60 = vadd.f32 %v3974_v31, %v2217_v49  ;;  %v2234_v2 = vpop.f32.mrf.mxu0 }
 0x1bf   :  { %v2235_v42 = vadd.f32 %v2234_v2, %v5492_v32  ;;  %v2603_v54 = vpop.f32.mrf.mxu1 }
 0x1c0   :  { %v5637_v23 = vadd.f32 %v2603_v54, %v2211_v40  ;;  %v3873_v47 = vpop.f32.mrf.mxu0 }
 0x1c1   :  { %v2253_v53 = vadd.f32 %v3873_v47, %v5496_v12  ;;  %v3977_v25 = vpop.f32.mrf.mxu1 }
 0x1c2   :  { %v5640_v41 = vadd.f32 %v3977_v25, %v2229_v20  ;;  %v2246_v14 = vpop.f32.mrf.mxu0 }
 0x1c3   :  { %v2247_v30 = vadd.f32 %v2246_v14, %v5499_v21  ;;  %v2615_v56 = vpop.f32.mrf.mxu1 }
 0x1c4   :  { %v5643_v22 = vadd.f32 %v2615_v56, %v2223_v33  ;;  %v3876_v49 = vpop.f32.mrf.mxu0 }
 0x1c5   :  { %v2265_v6 = vadd.f32 %v3876_v49, %v5502_v57  ;;  %v3980_v46 = vpop.f32.mrf.mxu1 }
 0x1c6   :  { %v5646_v32 = vadd.f32 %v3980_v46, %v2241_v3  ;;  %v2258_v40 = vpop.f32.mrf.mxu0 }
 0x1c7   :  { %v2259_v31 = vadd.f32 %v2258_v40, %v5505_v34  ;;  %v2627_v2 = vpop.f32.mrf.mxu1 }
 0x1c8   :  { %v5649_v12 = vadd.f32 %v2627_v2, %v2235_v42  ;;  %v3879_v20 = vpop.f32.mrf.mxu0 }
 0x1c9   :  { %v2277_v54 = vadd.f32 %v3879_v20, %v5508_v55  ;;  %v3983_v47 = vpop.f32.mrf.mxu1 }
 0x1ca   :  { %v5652_v21 = vadd.f32 %v3983_v47, %v2253_v53  ;;  %v2270_v33 = vpop.f32.mrf.mxu0 }
 0x1cb   :  { %v2271_v25 = vadd.f32 %v2270_v33, %v5511_v62  ;;  %v2639_v14 = vpop.f32.mrf.mxu1 }
 0x1cc   :  { %v5655_v57 = vadd.f32 %v2639_v14, %v2247_v30  ;;  %v3882_v3 = vpop.f32.mrf.mxu0 }
 0x1cd   :  { %v3986_v56 = vpop.f32.mrf.mxu1  ;;  %v2289_v62 = vadd.f32 %v3882_v3, %v5514_v1 }
 0x1ce   :  { %v5657_v49 = vadd.f32 %v3986_v56, %v2265_v6  ;;  %v2282_v34 = vpop.f32.mrf.mxu0 }
 0x1cf   :  { %v2283_v42 = vadd.f32 %v2282_v34, %v5517_v36  ;;  %v2651_v46 = vpop.f32.mrf.mxu1 }
 0x1d0   :  { %v5660_v40 = vadd.f32 %v2651_v46, %v2259_v31  ;;  %v3885_v55 = vpop.f32.mrf.mxu0 }
 0x1d1   :  { %v3989_v2 = vpop.f32.mrf.mxu1  ;;  %v2301_v36 = vadd.f32 %v3885_v55, %v5520_v24 }
 0x1d2   :  { %v5662_v53 = vadd.f32 %v3989_v2, %v2277_v54  ;;  %v2294_v20 = vpop.f32.mrf.mxu0 }
 0x1d3   :  { %v2663_v47 = vpop.f32.mrf.mxu1  ;;  %v2295_v2 = vadd.f32 %v2294_v20, %v5523_v27 }
 0x1d4   :  { %v5665_v30 = vadd.f32 %v2663_v47, %v2271_v25  ;;  %v3888_v33 = vpop.f32.mrf.mxu0 }
 0x1d5   :  { %v3992_v14 = vpop.f32.mrf.mxu1  ;;  %v2313_v47 = vadd.f32 %v3888_v33, %v5526_v18 }
 0x1d6   :  { %v5667_v6 = vadd.f32 %v3992_v14, %v2289_v62  ;;  %v2306_v56 = vpop.f32.mrf.mxu0 }
 0x1d7   :  { %v2675_v0 = vpop.f32.mrf.mxu1  ;;  %v2307_v31 = vadd.f32 %v2306_v56, %v5529_v26 }
 0x1d8   :  { %v5672_v34 = vadd.f32 %v2675_v0, %v2283_v42  ;;  %v3891_v54 = vpop.f32.mrf.mxu0 }
 0x1d9   :  { %v3995_v46 = vpop.f32.mrf.mxu1  ;;  %v2325_v20 = vadd.f32 %v3891_v54, %v5532_v15 }
 0x1da   :  { %v5675_v1 = vadd.f32 %v3995_v46, %v2301_v36  ;;  %v2318_v25 = vpop.f32.mrf.mxu0 }
 0x1db   :  { %v2687_v3 = vpop.f32.mrf.mxu1 }
 0x1dc   :  { %v2688_v14 = vadd.f32 %v2687_v3, %v2295_v2  ;;  %v3894_v24 = vpop.f32.mrf.mxu0  ;;  %v2319_v2 = vadd.f32 %v2318_v25, %v5535_v61 }
 0x1dd   :  { %v3998_v55 = vpop.f32.mrf.mxu1  ;;  %v2337_v56 = vadd.f32 %v3894_v24, %v5538_v7 }
 0x1de   :  { %v2914_v0 = vmax.f32 %v5634_v60, %v2688_v14  ;;  %v5682_v42 = vadd.f32 %v3998_v55, %v2313_v47  ;;  %v2330_v48 = vpop.f32.mrf.mxu0 }
 0x1df   :  { %v2699_v27 = vpop.f32.mrf.mxu1 }
 0x1e0   :  { %v2917_v36 = vmax.f32 %v5649_v12, %v5682_v42  ;;  %v2700_v18 = vadd.f32 %v2699_v27, %v2307_v31  ;;  %v3897_v33 = vpop.f32.mrf.mxu0  ;;  %v2331_v31 = vadd.f32 %v2330_v48, %v5541_v43 }
 0x1e1   :  { %v4001_v46 = vpop.f32.mrf.mxu1  ;;  %v2349_v25 = vadd.f32 %v3897_v33, %v5544_v50 }
 0x1e2   :  { %v2916_v3 = vmax.f32 %v5640_v41, %v2700_v18  ;;  %v5689_v62 = vadd.f32 %v4001_v46, %v2325_v20  ;;  %v2342_v26 = vpop.f32.mrf.mxu0 }
 0x1e3   :  { %v2711_v60 = vpop.f32.mrf.mxu1  ;;  %v2343_v46 = vadd.f32 %v2342_v26, %v5547_v38  ;;  %v6324_v26 = vld [vmem:[#allocation40_spill] sm:$0xff] }
 0x1e4   :  { %v2919_v47 = vmax.f32 %v5655_v57, %v5689_v62  ;;  %v2712_v15 = vadd.f32 %v2711_v60, %v2319_v2  ;;  %v3900_v54 = vpop.f32.mrf.mxu0 }
 0x1e5   :  { %v4004_v14 = vpop.f32.mrf.mxu1 }
 0x1e6   :  { %v2918_v55 = vmax.f32 %v5646_v32, %v2712_v15  ;;  %v5696_v27 = vadd.f32 %v4004_v14, %v2337_v56  ;;  %v2354_v61 = vpop.f32.mrf.mxu0  ;;  %v2361_v32 = vadd.f32 %v3900_v54, %v5550_v58  ;;  %v6325_v56 = vld [vmem:[#allocation5_spill] sm:$0xff] }
 0x1e7   :  { %v2723_v41 = vpop.f32.mrf.mxu1  ;;  %v2355_v14 = vadd.f32 %v2354_v61, %v5553_v13 }
 0x1e8   :  { %v2724_v7 = vadd.f32 %v2723_v41, %v2331_v31  ;;  %v3903_v24 = vpop.f32.mrf.mxu0 }
 0x1e9   :  { %v4007_v18 = vpop.f32.mrf.mxu1 }
 0x1ea   :  { %v2920_v2 = vmax.f32 %v5652_v21, %v2724_v7  ;;  %v5703_v60 = vadd.f32 %v4007_v18, %v2349_v25  ;;  %v2366_v43 = vpop.f32.mrf.mxu0  ;;  %v2373_v25 = vadd.f32 %v3903_v24, %v6324_v26 }
 0x1eb   :  { %v2735_v48 = vpop.f32.mrf.mxu1 }
 0x1ec   :  { %v2736_v50 = vadd.f32 %v2735_v48, %v2343_v46  ;;  %v3906_v33 = vpop.f32.mrf.mxu0  ;;  %v2367_v46 = vadd.f32 %v2366_v43, %v6325_v56 }
 0x1ed   :  { %v4010_v15 = vpop.f32.mrf.mxu1 }
 0x1ee   :  { %v2922_v31 = vmax.f32 %v5657_v49, %v2736_v50  ;;  %v5710_v41 = vadd.f32 %v4010_v15, %v2361_v32  ;;  %v2378_v38 = vpop.f32.mrf.mxu0  ;;  %v2385_v49 = vadd.f32 %v3906_v33, %v5562_v4  ;;  %v6327_v33 = vmax.f32 %v5643_v22, %v5675_v1 }
 0x1ef   :  { %v2747_v21 = vpop.f32.mrf.mxu1  ;;  %v2379_v26 = vadd.f32 %v2378_v38, %v5565_v37 }
 0x1f0   :  { %v2748_v58 = vadd.f32 %v2747_v21, %v2355_v14  ;;  %v3909_v54 = vpop.f32.mrf.mxu0  ;;  %v6326_v14 = vmax.f32 %v5637_v23, %v5667_v6 }
 0x1f1   :  { %v4013_v18 = vpop.f32.mrf.mxu1 }
 0x1f2   :  { %v2924_v48 = vmax.f32 %v5662_v53, %v2748_v58  ;;  %v2766_v20 = vadd.f32 %v4013_v18, %v2373_v25  ;;  %v2390_v13 = vpop.f32.mrf.mxu0  ;;  %v2397_v53 = vadd.f32 %v3909_v54, %v5568_v29 }
 0x1f3   :  { %v2759_v61 = vpop.f32.mrf.mxu1 }
 0x1f4   :  { %v5718_v32 = vmax.f32 %v2914_v0, %v2766_v20  ;;  %v2760_v50 = vadd.f32 %v2759_v61, %v2367_v46  ;;  %v3912_v15 = vpop.f32.mrf.mxu0  ;;  %v2391_v20 = vadd.f32 %v2390_v13, %v5571_v35 }
 0x1f5   :  { %v4016_v24 = vpop.f32.mrf.mxu1  ;;  %v2409_v18 = vadd.f32 %v3912_v15, %v5574_v59 }
 0x1f6   :  { %v2926_v21 = vmax.f32 %v6326_v14, %v2760_v50  ;;  %v2778_v7 = vadd.f32 %v4016_v24, %v2385_v49  ;;  %v2402_v43 = vpop.f32.mrf.mxu0 }
 0x1f7   :  { %v2771_v56 = vpop.f32.mrf.mxu1  ;;  %v2403_v54 = vadd.f32 %v2402_v43, %v5577_v17 }
 0x1f8   :  { %v5725_v25 = vmax.f32 %v2916_v3, %v2778_v7  ;;  %v2772_v58 = vadd.f32 %v2771_v56, %v2379_v26  ;;  %v3915_v4 = vpop.f32.mrf.mxu0 }
 0x1f9   :  { %v4019_v0 = vpop.f32.mrf.mxu1  ;;  %v2421_v61 = vadd.f32 %v3915_v4, %v5580_v45 }
 0x1fa   :  { %v5731_v37 = vmax.f32 %v6327_v33, %v2772_v58  ;;  %v2790_v38 = vadd.f32 %v4019_v0, %v2397_v53  ;;  %v2414_v23 = vpop.f32.mrf.mxu0  ;;  %v6329_v0 = vld [vmem:[#allocation6_spill] sm:$0xff] }
 0x1fb   :  { %v2783_v6 = vpop.f32.mrf.mxu1  ;;  %v2415_v15 = vadd.f32 %v2414_v23, %v5583_v16  ;;  %v6328_v16 = vmax.f32 %v5660_v40, %v5696_v27 }
 0x1fc   :  { %v5734_v46 = vmax.f32 %v2918_v55, %v2790_v38  ;;  %v2784_v29 = vadd.f32 %v2783_v6, %v2391_v20  ;;  %v3918_v3 = vpop.f32.mrf.mxu0 }
 0x1fd   :  { %v4022_v7 = vpop.f32.mrf.mxu1  ;;  %v2433_v24 = vadd.f32 %v3918_v3, %v5586_v9 }
 0x1fe   :  { %v5740_v35 = vmax.f32 %v2917_v36, %v2784_v29  ;;  %v2802_v22 = vadd.f32 %v4022_v7, %v2409_v18  ;;  %v2426_v1 = vpop.f32.mrf.mxu0  ;;  %v6331_v7 = vmax.f32 %v5672_v34, %v5710_v41 }
 0x1ff   :  { %v2795_v13 = vpop.f32.mrf.mxu1  ;;  %v2427_v43 = vadd.f32 %v2426_v1, %v5589_v39  ;;  %v6330_v39 = vmax.f32 %v5665_v30, %v5703_v60 }
 0x200   :  { %v5743_v49 = vmax.f32 %v2920_v2, %v2802_v22  ;;  %v2796_v59 = vadd.f32 %v2795_v13, %v2403_v54  ;;  %v3921_v55 = vpop.f32.mrf.mxu0 }
 0x201   :  { %v4025_v50 = vpop.f32.mrf.mxu1  ;;  %v2445_v53 = vadd.f32 %v3921_v55, %v5592_v8 }
 0x202   :  { %v5749_v17 = vmax.f32 %v2919_v47, %v2796_v59  ;;  %v2814_v12 = vadd.f32 %v4025_v50, %v2421_v61  ;;  %v2438_v42 = vpop.f32.mrf.mxu0 }
 0x203   :  { %v2807_v36 = vpop.f32.mrf.mxu1  ;;  %v2439_v20 = vadd.f32 %v2438_v42, %v6329_v0 }
 0x204   :  { %v5752_v26 = vmax.f32 %v2922_v31, %v2814_v12  ;;  %v2808_v45 = vadd.f32 %v2807_v36, %v2415_v15  ;;  %v3924_v2 = vpop.f32.mrf.mxu0 }
 0x205   :  { %v4028_v14 = vpop.f32.mrf.mxu1  ;;  %v2457_v23 = vadd.f32 %v3924_v2, %v5598_v63 }
 0x206   :  { %v5758_v56 = vmax.f32 %v6328_v16, %v2808_v45  ;;  %v2826_v57 = vadd.f32 %v4028_v14, %v2433_v24  ;;  %v2450_v62 = vpop.f32.mrf.mxu0 }
 0x207   :  { %v2819_v47 = vpop.f32.mrf.mxu1  ;;  %v2451_v29 = vadd.f32 %v2450_v62, %v5601_v44 }
 0x208   :  { %v5761_v58 = vmax.f32 %v2924_v48, %v2826_v57  ;;  %v2820_v9 = vadd.f32 %v2819_v47, %v2427_v43  ;;  %v3927_v31 = vpop.f32.mrf.mxu0  ;;  %v6332_v57 = vld [vmem:[#allocation44_spill] sm:$0xff] }
 0x209   :  { %v4031_v4 = vpop.f32.mrf.mxu1  ;;  %v2469_v1 = vadd.f32 %v3927_v31, %v5604_v5 }
 0x20a   :  { %v5767_v33 = vmax.f32 %v6330_v39, %v2820_v9  ;;  %v2838_v40 = vadd.f32 %v4031_v4, %v2445_v53  ;;  %v2462_v27 = vpop.f32.mrf.mxu0 }
 0x20b   :  { %v2831_v38 = vpop.f32.mrf.mxu1  ;;  %v2463_v61 = vadd.f32 %v2462_v27, %v5607_v19 }
 0x20c   :  { %v2939_v6 = vmax.f32 %v2926_v21, %v2838_v40  ;;  %v2832_v18 = vadd.f32 %v2831_v38, %v2439_v20  ;;  %v3930_v8 = vpop.f32.mrf.mxu0 }
 0x20d   :  { %v4034_v48 = vpop.f32.mrf.mxu1  ;;  %v2481_v15 = vadd.f32 %v3930_v8, %v5610_v10 }
 0x20e   :  { %v2952_v3 = vmax.f32 %v2939_v6, 0.0  ;;  %v5774_v54 = vmax.f32 %v6331_v7, %v2832_v18  ;;  %v2850_v30 = vadd.f32 %v4034_v48, %v2457_v23  ;;  %v2474_v60 = vpop.f32.mrf.mxu0  ;;  %v6333_v23 = vld [vmem:[#allocation7_spill] sm:$0xff]  ;;  %v6334_v48 = vld [vmem:[#allocation46_spill] sm:$0xff] }
 0x20f   :  { %v2843_v22 = vpop.f32.mrf.mxu1  ;;  %v2475_v19 = vadd.f32 %v2474_v60, %v5613_v11 }
 0x210   :  { %2965 = vst [vmem:[%s5839_s2] sm:$0xff] %v2952_v3  ;;  %v2941_v63 = vmax.f32 %v5731_v37, %v2850_v30  ;;  %v2844_v21 = vadd.f32 %v2843_v22, %v2451_v29  ;;  %v3933_v13 = vpop.f32.mrf.mxu0 }
 0x211   :  { %v4037_v44 = vpop.f32.mrf.mxu1  ;;  %v2493_v14 = vadd.f32 %v3933_v13, %v5616_v52 }
 0x212   :  { %v2954_v59 = vmax.f32 %v2941_v63, 0.0  ;;  %v2940_v34 = vmax.f32 %v5718_v32, %v2844_v21  ;;  %v2862_v41 = vadd.f32 %v4037_v44, %v2469_v1  ;;  %v2486_v55 = vpop.f32.mrf.mxu0 }
 0x213   :  { %v2855_v50 = vpop.f32.mrf.mxu1  ;;  %v2487_v62 = vadd.f32 %v2486_v55, %v6332_v57 }
 0x214   :  { %2967 = vst [vmem:[%s5839_s2 + $0x10] sm:$0xff] %v2954_v59  ;;  %v2953_v5 = vmax.f32 %v2940_v34, 0.0  ;;  %v2943_v37 = vmax.f32 %v5740_v35, %v2862_v41  ;;  %v2856_v12 = vadd.f32 %v2855_v50, %v2463_v61  ;;  %v3936_v42 = vpop.f32.mrf.mxu0 }
 0x215   :  { %v4040_v36 = vpop.f32.mrf.mxu1  ;;  %v2505_v31 = vadd.f32 %v3936_v42, %v5622_v51 }
 0x216   :  { %2966 = vst [vmem:[%s5839_s2 + $0x8] sm:$0xff] %v2953_v5  ;;  %v2956_v32 = vmax.f32 %v2943_v37, 0.0  ;;  %v2942_v24 = vmax.f32 %v5725_v25, %v2856_v12  ;;  %v2874_v10 = vadd.f32 %v4040_v36, %v2481_v15  ;;  %v2498_v45 = vpop.f32.mrf.mxu0 }
 0x217   :  { %v2867_v2 = vpop.f32.mrf.mxu1  ;;  %v2499_v39 = vadd.f32 %v2498_v45, %v5625_v28 }
 0x218   :  { %2969 = vst [vmem:[%s5839_s2 + $0x20] sm:$0xff] %v2956_v32  ;;  %v2955_v35 = vmax.f32 %v2942_v24, 0.0  ;;  %v2945_v43 = vmax.f32 %v5749_v17, %v2874_v10  ;;  %v2868_v11 = vadd.f32 %v2867_v2, %v2475_v19  ;;  %v3939_v52 = vpop.f32.mrf.mxu0 }
 0x219   :  { %v4043_v16 = vpop.f32.mrf.mxu1  ;;  %v2517_v6 = vadd.f32 %v3939_v52, %v6333_v23 }
 0x21a   :  { %2968 = vst [vmem:[%s5839_s2 + $0x18] sm:$0xff] %v2955_v35  ;;  %v2958_v25 = vmax.f32 %v2945_v43, 0.0  ;;  %v2944_v47 = vmax.f32 %v5734_v46, %v2868_v11  ;;  %v2886_v53 = vadd.f32 %v4043_v16, %v2493_v14  ;;  %v2510_v51 = vpop.f32.mrf.mxu0 }
 0x21b   :  { %v2879_v9 = vpop.f32.mrf.mxu1  ;;  %v2511_v29 = vadd.f32 %v2510_v51, %v6334_v48 }
 0x21c   :  { %2971 = vst [vmem:[%s5839_s2 + $0x30] sm:$0xff] %v2958_v25  ;;  %v2957_v17 = vmax.f32 %v2944_v47, 0.0  ;;  %v2947_v4 = vmax.f32 %v5758_v56, %v2886_v53  ;;  %v2880_v0 = vadd.f32 %v2879_v9, %v2487_v62 }
 0x21d   :  { %v4046_v20 = vpop.f32.mrf.mxu1 }
 0x21e   :  { %2970 = vst [vmem:[%s5839_s2 + $0x28] sm:$0xff] %v2957_v17  ;;  %v2960_v46 = vmax.f32 %v2947_v4, 0.0  ;;  %v2946_v40 = vmax.f32 %v5743_v49, %v2880_v0  ;;  %v2898_v27 = vadd.f32 %v4046_v20, %v2505_v31 }
 0x21f   :  { %v2891_v38 = vpop.f32.mrf.mxu1 }
 0x220   :  { %2973 = vst [vmem:[%s5839_s2 + $0x40] sm:$0xff] %v2960_v46  ;;  %v2959_v56 = vmax.f32 %v2946_v40, 0.0  ;;  %v2949_v18 = vmax.f32 %v5767_v33, %v2898_v27  ;;  %v2892_v28 = vadd.f32 %v2891_v38, %v2499_v39 }
 0x221   :  { %v4049_v8 = vpop.f32.mrf.mxu1 }
 0x222   :  { %2972 = vst [vmem:[%s5839_s2 + $0x38] sm:$0xff] %v2959_v56  ;;  %v2962_v49 = vmax.f32 %v2949_v18, 0.0  ;;  %v2948_v3 = vmax.f32 %v5752_v26, %v2892_v28  ;;  %v2910_v7 = vadd.f32 %v4049_v8, %v2517_v6 }
 0x223   :  { %v2903_v30 = vpop.f32.mrf.mxu1 }
 0x224   :  { %2975 = vst [vmem:[%s5839_s2 + $0x50] sm:$0xff] %v2962_v49  ;;  %v2961_v60 = vmax.f32 %v2948_v3, 0.0  ;;  %v2951_v33 = vmax.f32 %v5774_v54, %v2910_v7  ;;  %v2904_v22 = vadd.f32 %v2903_v30, %v2511_v29 }
 0x226   :  { %2974 = vst [vmem:[%s5839_s2 + $0x48] sm:$0xff] %v2961_v60  ;;  %v2964_v1 = vmax.f32 %v2951_v33, 0.0  ;;  %v2950_v63 = vmax.f32 %v5761_v58, %v2904_v22 }
 0x228   :  { %2977 = vst [vmem:[%s5839_s2 + $0x60] sm:$0xff] %v2964_v1  ;;  %v2963_v26 = vmax.f32 %v2950_v63, 0.0 }
 0x22a   :  { %2976 = vst [vmem:[%s5839_s2 + $0x58] sm:$0xff] %v2963_v26 }

</bundles_post_ra>
